<compile_context>
chip_gen: v5e
topology: v5e:2x2
jax: 0.10.0
libtpu: 0.0.40
codegen_flags: <defaults>
</compile_context>

<pallas_src>
import numpy as np
import jax
import jax.numpy as jnp
from jax.experimental import pallas as pl
from jax.experimental.pallas import tpu as pltpu


# ---------------------------------------------------------------------------
# Fused MLP kernel: (B,784) -> Linear+ReLU -> Linear+ReLU -> Linear
# All operands are whole-array VMEM-resident; no grid needed at these sizes.
# ---------------------------------------------------------------------------
def _mlp_fused_kernel(x_ref, w1_ref, b1_ref, w2_ref, b2_ref, w3_ref, b3_ref,
                      o_ref):
    # Layer 1: (B,784) @ (784,512) + b1, ReLU   -- lane-dense (512 lanes)
    h1 = jnp.dot(x_ref[...], w1_ref[...], preferred_element_type=jnp.float32)
    h1 = jnp.maximum(h1 + b1_ref[...], 0.0)
    # Layer 2: (B,512) @ (512,256) + b2, ReLU   -- lane-dense (256 lanes)
    h2 = jnp.dot(h1, w2_ref[...], preferred_element_type=jnp.float32)
    h2 = jnp.maximum(h2 + b2_ref[...], 0.0)
    # Layer 3 (logits): (B,256) @ (256,n_classes) + b3
    o_ref[...] = (
        jnp.dot(h2, w3_ref[...], preferred_element_type=jnp.float32)
        + b3_ref[...]
    )


def simple_cnn_forward(x, params):
    """x: (B, 1, 28, 28) or (B, 28, 28) float32 -> logits (B, n_classes)."""
    B = x.shape[0]
    xf = x.reshape(B, 28 * 28)            # nn.Flatten()
    n_classes = params["w3"].shape[1]
    vmem = pl.BlockSpec(memory_space=pltpu.MemorySpace.VMEM)
    return pl.pallas_call(
        _mlp_fused_kernel,
        out_shape=jax.ShapeDtypeStruct((B, n_classes), jnp.float32),
        in_specs=[vmem] * 7,
        out_specs=vmem,
    )(xf, params["w1"], params["b1"],
      params["w2"], params["b2"],
      params["w3"], params["b3"])


# ---------------------------------------------------------------------------
# Parameter creation: PyTorch-layout weights converted ONCE to kernel layout
# (in_features, out_features) and (1, out_features) biases.
# ---------------------------------------------------------------------------
def make_params(key, n_classes=2):
    dims = [(28 * 28, 512), (512, 256), (256, n_classes)]
    ks = jax.random.split(key, 2 * len(dims))
    params = {}
    for i, (fan_in, fan_out) in enumerate(dims):
        bound = 1.0 / np.sqrt(fan_in)     # nn.Linear default init range
        # PyTorch layout: weight (out, in), bias (out,)
        w_pt = jax.random.uniform(ks[2 * i], (fan_out, fan_in),
                                  jnp.float32, -bound, bound)
        b_pt = jax.random.uniform(ks[2 * i + 1], (fan_out,),
                                  jnp.float32, -bound, bound)
        # Hoisted relayout to kernel-friendly layout (done once, not per call).
        params[f"w{i+1}"] = jnp.asarray(w_pt.T)               # (in, out)
        params[f"b{i+1}"] = jnp.asarray(b_pt.reshape(1, -1))  # (1, out)
    return params


# ---------------------------------------------------------------------------
# Pure-numpy reference of SimpleCNN.forward for a correctness self-check.
# ---------------------------------------------------------------------------
def ref_forward(x, params):
    xf = np.asarray(x, np.float64).reshape(x.shape[0], -1)
    h = xf
    for i in range(1, 4):
        w = np.asarray(params[f"w{i}"], np.float64)   # (in, out)
        b = np.asarray(params[f"b{i}"], np.float64)   # (1, out)
        h = h @ w + b
        if i < 3:
            h = np.maximum(h, 0.0)
    return h


if __name__ == "__main__":
    n_classes = 2
    B = 2

    key = jax.random.PRNGKey(0)
    kx, kp = jax.random.split(key)
    x = jax.random.normal(kx, (B, 1, 28, 28), jnp.float32)
    params = make_params(kp, n_classes=n_classes)

    out = simple_cnn_forward(x, params)
    out = jax.block_until_ready(out)

    ref = ref_forward(np.asarray(x), params)
    err = float(np.max(np.abs(np.asarray(out) - ref)))
    assert np.allclose(np.asarray(out), ref, atol=1e-3, rtol=1e-3), err

    print("KERNEL_OK")
</pallas_src>

<mosaic_0001>
module attributes {stable_mosaic.version = 11 : i64} {
  func.func @_mlp_fused_kernel(%arg0: memref<2x784xf32, #tpu.memory_space<vmem>>, %arg1: memref<784x512xf32, #tpu.memory_space<vmem>>, %arg2: memref<1x512xf32, #tpu.memory_space<vmem>>, %arg3: memref<512x256xf32, #tpu.memory_space<vmem>>, %arg4: memref<1x256xf32, #tpu.memory_space<vmem>>, %arg5: memref<256x2xf32, #tpu.memory_space<vmem>>, %arg6: memref<1x2xf32, #tpu.memory_space<vmem>>, %arg7: memref<2x2xf32, #tpu.memory_space<vmem>>) attributes {dimension_semantics = [], scalar_prefetch = 0 : i64, scratch_operands = 0 : i64, tpu.core_type = #tpu.core_type<tc>} {
    %c0 = arith.constant 0 : index
    %c0_0 = arith.constant 0 : index
    %0 = vector.load %arg0[%c0, %c0_0] : memref<2x784xf32, #tpu.memory_space<vmem>>, vector<2x784xf32>
    %c0_1 = arith.constant 0 : index
    %c0_2 = arith.constant 0 : index
    %1 = vector.load %arg1[%c0_1, %c0_2] : memref<784x512xf32, #tpu.memory_space<vmem>>, vector<784x512xf32>
    %cst = arith.constant dense<0.000000e+00> : vector<2x512xf32>
    %2 = tpu.matmul %0, %1, %cst {dimension_numbers = #tpu.dot_dimension_numbers<[1], [0], [0], [1], [0, 0, 1, 1], [], []>} : vector<2x784xf32>, vector<784x512xf32>, vector<2x512xf32> -> vector<2x512xf32>
    %c0_3 = arith.constant 0 : index
    %c0_4 = arith.constant 0 : index
    %3 = vector.load %arg2[%c0_3, %c0_4] : memref<1x512xf32, #tpu.memory_space<vmem>>, vector<1x512xf32>
    %4 = vector.broadcast %3 : vector<1x512xf32> to vector<2x512xf32>
    %5 = arith.addf %2, %4 : vector<2x512xf32>
    %cst_5 = arith.constant 0.000000e+00 : f32
    %6 = vector.broadcast %cst_5 : f32 to vector<2x512xf32>
    %7 = arith.maximumf %5, %6 : vector<2x512xf32>
    %c0_6 = arith.constant 0 : index
    %c0_7 = arith.constant 0 : index
    %8 = vector.load %arg3[%c0_6, %c0_7] : memref<512x256xf32, #tpu.memory_space<vmem>>, vector<512x256xf32>
    %cst_8 = arith.constant dense<0.000000e+00> : vector<2x256xf32>
    %9 = tpu.matmul %7, %8, %cst_8 {dimension_numbers = #tpu.dot_dimension_numbers<[1], [0], [0], [1], [0, 0, 1, 1], [], []>} : vector<2x512xf32>, vector<512x256xf32>, vector<2x256xf32> -> vector<2x256xf32>
    %c0_9 = arith.constant 0 : index
    %c0_10 = arith.constant 0 : index
    %10 = vector.load %arg4[%c0_9, %c0_10] : memref<1x256xf32, #tpu.memory_space<vmem>>, vector<1x256xf32>
    %11 = vector.broadcast %10 : vector<1x256xf32> to vector<2x256xf32>
    %12 = arith.addf %9, %11 : vector<2x256xf32>
    %cst_11 = arith.constant 0.000000e+00 : f32
    %13 = vector.broadcast %cst_11 : f32 to vector<2x256xf32>
    %14 = arith.maximumf %12, %13 : vector<2x256xf32>
    %c0_12 = arith.constant 0 : index
    %c0_13 = arith.constant 0 : index
    %15 = vector.load %arg5[%c0_12, %c0_13] : memref<256x2xf32, #tpu.memory_space<vmem>>, vector<256x2xf32>
    %cst_14 = arith.constant dense<0.000000e+00> : vector<2x2xf32>
    %16 = tpu.matmul %14, %15, %cst_14 {dimension_numbers = #tpu.dot_dimension_numbers<[1], [0], [0], [1], [0, 0, 1, 1], [], []>} : vector<2x256xf32>, vector<256x2xf32>, vector<2x2xf32> -> vector<2x2xf32>
    %c0_15 = arith.constant 0 : index
    %c0_16 = arith.constant 0 : index
    %17 = vector.load %arg6[%c0_15, %c0_16] : memref<1x2xf32, #tpu.memory_space<vmem>>, vector<1x2xf32>
    %18 = vector.broadcast %17 : vector<1x2xf32> to vector<2x2xf32>
    %19 = arith.addf %16, %18 : vector<2x2xf32>
    %c0_17 = arith.constant 0 : index
    %c0_18 = arith.constant 0 : index
    %20 = vector.load %arg7[%c0_17, %c0_18] : memref<2x2xf32, #tpu.memory_space<vmem>>, vector<2x2xf32>
    tpu.vector_store %arg7[%c0_17, %c0_18], %19 {strides = array<i32>} : memref<2x2xf32, #tpu.memory_space<vmem>>, vector<2x2xf32>,
    return
  }
}

</mosaic_0001>

<bundles_post_ra>
// kernel: tpu_custom_call.1
= control target key start
LH: loop header
LB: loop body
LE: loop exit
PB: predicated region body
PF: predicated region fallthrough
CT: control target
= control target key end

     0   :  { %12 = vsyncpa [#allocation3], 0  ;;  %s1924_s0 = inlined_call_operand.hbm [shape: f32[2,784], index: 0, kind: input, shape index: {}]   ;;  %s1925_s1 = inlined_call_operand.hbm [shape: f32[784,512], index: 1, kind: input, shape index: {}]   ;;  %s1926_s2 = inlined_call_operand.hbm [shape: f32[1,512], index: 2, kind: input, shape index: {}]   ;;  %s1927_s3 = inlined_call_operand.hbm [shape: f32[512,256], index: 3, kind: input, shape index: {}]   ;;  %s1928_s4 = inlined_call_operand.hbm [shape: f32[1,256], index: 4, kind: input, shape index: {}]   ;;  %s1929_s5 = inlined_call_operand.vmem [shape: f32[256,2], index: 5, kind: input, shape index: {}]   ;;  %s1930_s6 = inlined_call_operand.hbm [shape: f32[1,2], index: 6, kind: input, shape index: {}]   ;;  %s1931_s7 = inlined_call_operand.hbm [shape: f32[2,2], index: 7, kind: output, shape index: {}]  }
   0x1   :  { %13 = vsyncpa [#allocation6], 0 }
   0x2   :  { %14 = vsyncpa [#allocation9], 0 }
   0x3   :  { %15 = vsyncpa [#allocation12], 0  ;;  %s32_s26 = sshll.u32 %s1925_s1, 4  ;;  %s33_s26 = int_to_ptr.hbm [resolvable:$true] %s32_s26 }
   0x4   :  { %16 = vsyncpa [#allocation4], 0  ;;  %s1697_s27 = smov [#allocation5]   ;;  %s56_s8 = sshll.u32 %s1927_s3, 4  ;;  %s57_s8 = int_to_ptr.hbm [resolvable:$true] %s56_s8 }
   0x5   :  { %s34_s28 = sshll.u32 %s1697_s27, 4  ;;  %s1698_s9 = smov 512   ;;  %s35_s28 = int_to_ptr.vmem [resolvable:$true] %s34_s28 }
   0x6   :  { %s1699_s10 = smov 32   ;;  %s1700_s11 = smov [#allocation8]  }
   0x7   :  { %40 = dma.hbm_to_vmem [thread:$0]  %s33_s26, 50176, %s35_s28, [#allocation6], %s1698_s9, %s1698_s9, %s1699_s10  }
   0x8   :  { %s58_s12 = sshll.u32 %s1700_s11, 4  ;;  %s1701_s13 = smov 256   ;;  %s59_s12 = int_to_ptr.vmem [resolvable:$true] %s58_s12 }
   0x9   :  { %s1702_s14 = smov 16   ;;  %s22_s16 = sshll.u32 %s1924_s0, 4  ;;  %s23_s16 = int_to_ptr.hbm [resolvable:$true] %s22_s16 }
   0xa   :  { %64 = dma.hbm_to_vmem [thread:$0]  %s57_s8, 16384, %s59_s12, [#allocation9], %s1701_s13, %s1701_s13, %s1702_s14  }
   0xb   :  { %s1703_s17 = smov [#allocation2]   ;;  %s46_s20 = sshll.u32 %s1926_s2, 4  ;;  %s47_s20 = int_to_ptr.hbm [resolvable:$true] %s46_s20 }
   0xc   :  { %s24_s18 = sshll.u32 %s1703_s17, 4  ;;  %s1704_s21 = smov [#allocation7]   ;;  %s25_s18 = int_to_ptr.vmem [resolvable:$true] %s24_s18 }
   0xd   :  { %27 = dma.hbm_to_vmem [thread:$0]  %s23_s16, 224, %s25_s18, [#allocation3]  }
   0xe   :  { %s48_s22 = sshll.u32 %s1704_s21, 4  ;;  %s70_s25 = sshll.u32 %s1928_s4, 4  ;;  %s49_s22 = int_to_ptr.vmem [resolvable:$true] %s48_s22  ;;  %s71_s25 = int_to_ptr.hbm [resolvable:$true] %s70_s25 }
   0xf   :  { %51 = dma.hbm_to_vmem [thread:$0]  %s47_s20, 64, %s49_s22, [#allocation6]  }
  0x10   :  { %s83_s27 = sshll.u32 %s1930_s6, 4  ;;  %s1705_s28 = smov [#allocation10]   ;;  %s84_s27 = int_to_ptr.hbm [resolvable:$true] %s83_s27 }
  0x11   :  { %s72_s29 = sshll.u32 %s1705_s28, 4  ;;  %s1706_s2 = smov [#allocation11]   ;;  %s73_s29 = int_to_ptr.vmem [resolvable:$true] %s72_s29 }
  0x12   :  { %75 = dma.hbm_to_vmem [thread:$0]  %s71_s25, 32, %s73_s29, [#allocation9]  }
  0x13   :  { %s85_s30 = sshll.u32 %s1706_s2, 4  ;;  %s86_s30 = int_to_ptr.vmem [resolvable:$true] %s85_s30 }
  0x14   :  { %88 = dma.hbm_to_vmem [thread:$0]  %s84_s27, 16, %s86_s30, [#allocation12]  }
  0x15   :  { %1687 = dma.done.wait [#allocation3], 224  }
  0x16   :  { %1688 = vsyncadd [#allocation3], 4294967072 }
  0x17   :  { %1689 = dma.done.wait [#allocation6], 50240  }
  0x18   :  { %1690 = vsyncadd [#allocation6], 4294917056 }
  0x19   :  { %1691 = dma.done.wait [#allocation9], 16416  }
  0x1a   :  { %1692 = vsyncadd [#allocation9], 4294950880 }
  0x1b   :  { %1693 = dma.done.wait [#allocation12], 16  }
  0x1c   :  { %1694 = vsyncadd [#allocation12], 4294967280  ;;  %v175_v0 = vld [vmem:[#allocation5 + $0x1e0] sm:$0xff]  ;;  %v113_v54 = vld [vmem:[#allocation2] sm:$0xff]  ;;  %vm535_vm0 = vcmask 130048   ;;  %s1483_s1 = sshll.u32 %s1931_s7, 4  ;;  %s1484_s1 = int_to_ptr.hbm [resolvable:$true] %s1483_s1 }
  0x1d   :  { %v239_v1 = vld [vmem:[#allocation5 + $0x3e0] sm:$0xff]  ;;  %538 = vmatpush.msra.mxu0 %v175_v0  ;;  %519 = vst [vmem:[#allocation1] ss:$4 sm:$0xff] %v113_v54  ;;  %v200_v54 = vld [vmem:[#allocation5 + $0x2a8] sm:$0xff]  ;;  %vm1474_vm1 = vcmask 9216  }
  0x1e   :  { %v303_v2 = vld [vmem:[#allocation5 + $0x5e0] sm:$0xff]  ;;  %558 = vmatpush.msra.mxu1 %v239_v1 }
  0x1f   :  { %v367_v3 = vld [vmem:[#allocation5 + $0x7e0] sm:$0xff]  ;;  %578 = vmatpush.msra.mxu2 %v303_v2 }
  0x20   :  { %v171_v4 = vld [vmem:[#allocation5 + $0x1c0] sm:$0xff]  ;;  %598 = vmatpush.msra.mxu3 %v367_v3 }
  0x21   :  { %v235_v5 = vld [vmem:[#allocation5 + $0x3c0] sm:$0xff]  ;;  %539 = vmatpush.msra.mxu0 %v171_v4  ;;  %v176_v4 = vld [vmem:[#allocation5 + $0x1e8] sm:$0xff] }
  0x22   :  { %v299_v6 = vld [vmem:[#allocation5 + $0x5c0] sm:$0xff]  ;;  %559 = vmatpush.msra.mxu1 %v235_v5 }
  0x23   :  { %v363_v7 = vld [vmem:[#allocation5 + $0x7c0] sm:$0xff]  ;;  %579 = vmatpush.msra.mxu2 %v299_v6 }
  0x24   :  { %v167_v8 = vld [vmem:[#allocation5 + $0x1a0] sm:$0xff]  ;;  %599 = vmatpush.msra.mxu3 %v363_v7 }
  0x25   :  { %v231_v9 = vld [vmem:[#allocation5 + $0x3a0] sm:$0xff]  ;;  %540 = vmatpush.msra.mxu0 %v167_v8  ;;  %v172_v8 = vld [vmem:[#allocation5 + $0x1c8] sm:$0xff] }
  0x26   :  { %v295_v10 = vld [vmem:[#allocation5 + $0x5a0] sm:$0xff]  ;;  %560 = vmatpush.msra.mxu1 %v231_v9 }
  0x27   :  { %v359_v11 = vld [vmem:[#allocation5 + $0x7a0] sm:$0xff]  ;;  %580 = vmatpush.msra.mxu2 %v295_v10 }
  0x28   :  { %v163_v12 = vld [vmem:[#allocation5 + $0x180] sm:$0xff]  ;;  %600 = vmatpush.msra.mxu3 %v359_v11  ;;  %v240_v11 = vld [vmem:[#allocation5 + $0x3e8] sm:$0xff] }
  0x29   :  { %v227_v13 = vld [vmem:[#allocation5 + $0x380] sm:$0xff]  ;;  %541 = vmatpush.msra.mxu0 %v163_v12 }
  0x2a   :  { %v291_v14 = vld [vmem:[#allocation5 + $0x580] sm:$0xff]  ;;  %561 = vmatpush.msra.mxu1 %v227_v13  ;;  %v168_v13 = vld [vmem:[#allocation5 + $0x1a8] sm:$0xff] }
  0x2b   :  { %v355_v15 = vld [vmem:[#allocation5 + $0x780] sm:$0xff]  ;;  %581 = vmatpush.msra.mxu2 %v291_v14  ;;  %v1768_v14 = vld.sshfl [vmem:[#allocation1] sm:$0xff pattern:$0x73625140] }
  0x2c   :  { %v159_v16 = vld [vmem:[#allocation5 + $0x160] sm:$0xff]  ;;  %601 = vmatpush.msra.mxu3 %v355_v15 }
  0x2d   :  { %v223_v17 = vld [vmem:[#allocation5 + $0x360] sm:$0xff]  ;;  %542 = vmatpush.msra.mxu0 %v159_v16  ;;  %v236_v16 = vld [vmem:[#allocation5 + $0x3c8] sm:$0xff] }
  0x2e   :  { %v287_v18 = vld [vmem:[#allocation5 + $0x560] sm:$0xff]  ;;  %562 = vmatpush.msra.mxu1 %v223_v17 }
  0x2f   :  { %v351_v19 = vld [vmem:[#allocation5 + $0x760] sm:$0xff]  ;;  %582 = vmatpush.msra.mxu2 %v287_v18 }
  0x30   :  { %v155_v20 = vld [vmem:[#allocation5 + $0x140] sm:$0xff]  ;;  %602 = vmatpush.msra.mxu3 %v351_v19  ;;  %v164_v19 = vld [vmem:[#allocation5 + $0x188] sm:$0xff] }
  0x31   :  { %v219_v21 = vld [vmem:[#allocation5 + $0x340] sm:$0xff]  ;;  %543 = vmatpush.msra.mxu0 %v155_v20  ;;  %v1774_v20 = vld.sshfl [vmem:[#allocation1 + $0x8] sm:$0xff pattern:$0x73625140] }
  0x32   :  { %v283_v22 = vld [vmem:[#allocation5 + $0x540] sm:$0xff]  ;;  %563 = vmatpush.msra.mxu1 %v219_v21  ;;  %v232_v21 = vld [vmem:[#allocation5 + $0x3a8] sm:$0xff] }
  0x33   :  { %v347_v23 = vld [vmem:[#allocation5 + $0x740] sm:$0xff]  ;;  %583 = vmatpush.msra.mxu2 %v283_v22 }
  0x34   :  { %v151_v24 = vld [vmem:[#allocation5 + $0x120] sm:$0xff]  ;;  %603 = vmatpush.msra.mxu3 %v347_v23 }
  0x35   :  { %v215_v25 = vld [vmem:[#allocation5 + $0x320] sm:$0xff]  ;;  %544 = vmatpush.msra.mxu0 %v151_v24  ;;  %v160_v24 = vld [vmem:[#allocation5 + $0x168] sm:$0xff] }
  0x36   :  { %v279_v26 = vld [vmem:[#allocation5 + $0x520] sm:$0xff]  ;;  %564 = vmatpush.msra.mxu1 %v215_v25  ;;  %v228_v25 = vld [vmem:[#allocation5 + $0x388] sm:$0xff] }
  0x37   :  { %v343_v27 = vld [vmem:[#allocation5 + $0x720] sm:$0xff]  ;;  %584 = vmatpush.msra.mxu2 %v279_v26 }
  0x38   :  { %v147_v28 = vld [vmem:[#allocation5 + $0x100] sm:$0xff]  ;;  %604 = vmatpush.msra.mxu3 %v343_v27 }
  0x39   :  { %v211_v29 = vld [vmem:[#allocation5 + $0x300] sm:$0xff]  ;;  %545 = vmatpush.msra.mxu0 %v147_v28  ;;  %v156_v28 = vld [vmem:[#allocation5 + $0x148] sm:$0xff] }
  0x3a   :  { %v275_v30 = vld [vmem:[#allocation5 + $0x500] sm:$0xff]  ;;  %565 = vmatpush.msra.mxu1 %v211_v29  ;;  %v114_v29 = vld [vmem:[#allocation2 + $0x8] sm:$0x3f] }
  0x3b   :  { %v339_v31 = vld [vmem:[#allocation5 + $0x700] sm:$0xff]  ;;  %585 = vmatpush.msra.mxu2 %v275_v30  ;;  %v224_v30 = vld [vmem:[#allocation5 + $0x368] sm:$0xff]  ;;  %521 = vst [vmem:[#allocation1 + $0x20] ss:$4 sm:$0xff] %v114_v29 }
  0x3c   :  { %v143_v32 = vld [vmem:[#allocation5 + $0xe0] sm:$0xff]  ;;  %605 = vmatpush.msra.mxu3 %v339_v31  ;;  %v352_v29 = vld [vmem:[#allocation5 + $0x768] sm:$0xff] }
  0x3d   :  { %v207_v33 = vld [vmem:[#allocation5 + $0x2e0] sm:$0xff]  ;;  %546 = vmatpush.msra.mxu0 %v143_v32 }
  0x3e   :  { %v271_v34 = vld [vmem:[#allocation5 + $0x4e0] sm:$0xff]  ;;  %566 = vmatpush.msra.mxu1 %v207_v33  ;;  %v152_v33 = vld [vmem:[#allocation5 + $0x128] sm:$0xff] }
  0x3f   :  { %v335_v35 = vld [vmem:[#allocation5 + $0x6e0] sm:$0xff]  ;;  %586 = vmatpush.msra.mxu2 %v271_v34  ;;  %v220_v34 = vld [vmem:[#allocation5 + $0x348] sm:$0xff] }
  0x40   :  { %v139_v36 = vld [vmem:[#allocation5 + $0xc0] sm:$0xff]  ;;  %606 = vmatpush.msra.mxu3 %v335_v35 }
  0x41   :  { %v203_v37 = vld [vmem:[#allocation5 + $0x2c0] sm:$0xff]  ;;  %547 = vmatpush.msra.mxu0 %v139_v36 }
  0x42   :  { %v267_v38 = vld [vmem:[#allocation5 + $0x4c0] sm:$0xff]  ;;  %567 = vmatpush.msra.mxu1 %v203_v37  ;;  %v148_v37 = vld [vmem:[#allocation5 + $0x108] sm:$0xff] }
  0x43   :  { %v331_v39 = vld [vmem:[#allocation5 + $0x6c0] sm:$0xff]  ;;  %587 = vmatpush.msra.mxu2 %v267_v38  ;;  %v216_v38 = vld [vmem:[#allocation5 + $0x328] sm:$0xff] }
  0x44   :  { %v135_v40 = vld [vmem:[#allocation5 + $0xa0] sm:$0xff]  ;;  %607 = vmatpush.msra.mxu3 %v331_v39 }
  0x45   :  { %v199_v41 = vld [vmem:[#allocation5 + $0x2a0] sm:$0xff]  ;;  %548 = vmatpush.msra.mxu0 %v135_v40 }
  0x46   :  { %v263_v42 = vld [vmem:[#allocation5 + $0x4a0] sm:$0xff]  ;;  %568 = vmatpush.msra.mxu1 %v199_v41  ;;  %v144_v41 = vld [vmem:[#allocation5 + $0xe8] sm:$0xff] }
  0x47   :  { %v327_v43 = vld [vmem:[#allocation5 + $0x6a0] sm:$0xff]  ;;  %588 = vmatpush.msra.mxu2 %v263_v42  ;;  %v212_v42 = vld [vmem:[#allocation5 + $0x308] sm:$0xff] }
  0x48   :  { %v131_v44 = vld [vmem:[#allocation5 + $0x80] sm:$0xff]  ;;  %608 = vmatpush.msra.mxu3 %v327_v43 }
  0x49   :  { %v195_v45 = vld [vmem:[#allocation5 + $0x280] sm:$0xff]  ;;  %549 = vmatpush.msra.mxu0 %v131_v44 }
  0x4a   :  { %v259_v46 = vld [vmem:[#allocation5 + $0x480] sm:$0xff]  ;;  %569 = vmatpush.msra.mxu1 %v195_v45  ;;  %v140_v45 = vld [vmem:[#allocation5 + $0xc8] sm:$0xff] }
  0x4b   :  { %v323_v47 = vld [vmem:[#allocation5 + $0x680] sm:$0xff]  ;;  %589 = vmatpush.msra.mxu2 %v259_v46  ;;  %v208_v46 = vld [vmem:[#allocation5 + $0x2e8] sm:$0xff] }
  0x4c   :  { %v127_v48 = vld [vmem:[#allocation5 + $0x60] sm:$0xff]  ;;  %609 = vmatpush.msra.mxu3 %v323_v47 }
  0x4d   :  { %v191_v49 = vld [vmem:[#allocation5 + $0x260] sm:$0xff]  ;;  %550 = vmatpush.msra.mxu0 %v127_v48 }
  0x4e   :  { %v255_v50 = vld [vmem:[#allocation5 + $0x460] sm:$0xff]  ;;  %570 = vmatpush.msra.mxu1 %v191_v49  ;;  %v136_v49 = vld [vmem:[#allocation5 + $0xa8] sm:$0xff] }
  0x4f   :  { %v319_v51 = vld [vmem:[#allocation5 + $0x660] sm:$0xff]  ;;  %590 = vmatpush.msra.mxu2 %v255_v50  ;;  %v204_v50 = vld [vmem:[#allocation5 + $0x2c8] sm:$0xff] }
  0x50   :  { %v123_v52 = vld [vmem:[#allocation5 + $0x40] sm:$0xff]  ;;  %610 = vmatpush.msra.mxu3 %v319_v51 }
  0x51   :  { %v187_v53 = vld [vmem:[#allocation5 + $0x240] sm:$0xff]  ;;  %551 = vmatpush.msra.mxu0 %v123_v52 }
  0x52   :  { %v251_v55 = vld [vmem:[#allocation5 + $0x440] sm:$0xff]  ;;  %571 = vmatpush.msra.mxu1 %v187_v53  ;;  %v132_v53 = vld [vmem:[#allocation5 + $0x88] sm:$0xff] }
  0x53   :  { %v315_v56 = vld [vmem:[#allocation5 + $0x640] sm:$0xff]  ;;  %591 = vmatpush.msra.mxu2 %v251_v55 }
  0x54   :  { %v119_v57 = vld [vmem:[#allocation5 + $0x20] sm:$0xff]  ;;  %611 = vmatpush.msra.mxu3 %v315_v56 }
  0x55   :  { %v183_v58 = vld [vmem:[#allocation5 + $0x220] sm:$0xff]  ;;  %552 = vmatpush.msra.mxu0 %v119_v57  ;;  %v128_v57 = vld [vmem:[#allocation5 + $0x68] sm:$0xff] }
  0x56   :  { %v247_v59 = vld [vmem:[#allocation5 + $0x420] sm:$0xff]  ;;  %572 = vmatpush.msra.mxu1 %v183_v58  ;;  %v196_v58 = vld [vmem:[#allocation5 + $0x288] sm:$0xff] }
  0x57   :  { %v311_v60 = vld [vmem:[#allocation5 + $0x620] sm:$0xff]  ;;  %592 = vmatpush.msra.mxu2 %v247_v59 }
  0x58   :  { %v115_v61 = vld [vmem:[#allocation5] sm:$0xff]  ;;  %612 = vmatpush.msra.mxu3 %v311_v60 }
  0x59   :  { %v179_v62 = vld [vmem:[#allocation5 + $0x200] sm:$0xff]  ;;  %553 = vmatpush.msra.mxu0 %v115_v61  ;;  %v124_v61 = vld [vmem:[#allocation5 + $0x48] sm:$0xff] }
  0x5a   :  { %v243_v63 = vld [vmem:[#allocation5 + $0x400] sm:$0xff]  ;;  %573 = vmatpush.msra.mxu1 %v179_v62  ;;  %554 = vmatmul.f32.vlgmr.msra.gmra.mxu0 %v1768_v14  ;;  %v192_v62 = vld [vmem:[#allocation5 + $0x268] sm:$0xff] }
  0x5b   :  { %v307_v0 = vld [vmem:[#allocation5 + $0x600] sm:$0xff]  ;;  %593 = vmatpush.msra.mxu2 %v243_v63  ;;  %574 = vmatmul.f32.vlgmr.msra.gmra.mxu1 %v1774_v20 }
  0x5c   :  { %v431_v1 = vld [vmem:[#allocation5 + $0x9e0] sm:$0xff]  ;;  %613 = vmatpush.msra.mxu3 %v307_v0 }
  0x5d   :  { %v495_v2 = vld [vmem:[#allocation5 + $0xbe0] sm:$0xff]  ;;  %618 = vmatpush.msrb.mxu0 %v431_v1  ;;  %v120_v1 = vld [vmem:[#allocation5 + $0x28] sm:$0xff] }
  0x5e   :  { %v503_v3 = vld [vmem:[#allocation5 + $0xc20] sm:$0xff]  ;;  %638 = vmatpush.msrb.mxu1 %v495_v2  ;;  %678 = vmatpush.msrb.mxu3 %v176_v4  ;;  %v188_v4 = vld [vmem:[#allocation5 + $0x248] sm:$0xff] }
  0x5f   :  { %v427_v5 = vld [vmem:[#allocation5 + $0x9c0] sm:$0xff]  ;;  %672 = vmatpush.msrb.mxu2 %v503_v3 }
  0x60   :  { %v491_v6 = vld [vmem:[#allocation5 + $0xbc0] sm:$0xff]  ;;  %619 = vmatpush.msrb.mxu0 %v427_v5  ;;  %679 = vmatpush.msrb.mxu3 %v172_v8  ;;  %v184_v8 = vld [vmem:[#allocation5 + $0x228] sm:$0xff] }
  0x61   :  { %v499_v7 = vld [vmem:[#allocation5 + $0xc00] sm:$0xff]  ;;  %639 = vmatpush.msrb.mxu1 %v491_v6  ;;  %v116_v6 = vld [vmem:[#allocation5 + $0x8] sm:$0xff] }
  0x62   :  { %v1766_v9 = vld.sshfl [vmem:[#allocation1 + $0x10] sm:$0xff pattern:$0x73625140]  ;;  %673 = vmatpush.msrb.mxu2 %v499_v7  ;;  %v1771_v15 = vld.sshfl [vmem:[#allocation1 + $0x18] sm:$0xff pattern:$0x73625140]  ;;  %680 = vmatpush.msrb.mxu3 %v168_v13 }
  0x63   :  { %v423_v10 = vld [vmem:[#allocation5 + $0x9a0] sm:$0xff]  ;;  %594 = vmatmul.f32.vlgmr.msra.gmra.mxu2 %v1766_v9  ;;  %614 = vmatmul.f32.vlgmr.msra.gmra.mxu3 %v1771_v15  ;;  %v1780_v7 = vld.sshfl [vmem:[#allocation1 + $0x20] sm:$0xff pattern:$0x73625140] }
  0x64   :  { %v487_v12 = vld [vmem:[#allocation5 + $0xba0] sm:$0xff]  ;;  %620 = vmatpush.msrb.mxu0 %v423_v10  ;;  %698 = vmatpush.msra.mxu2 %v240_v11  ;;  %v368_v10 = vld [vmem:[#allocation5 + $0x7e8] sm:$0xff] }
  0x65   :  { %640 = vmatpush.msrb.mxu1 %v487_v12  ;;  %v419_v17 = vld [vmem:[#allocation5 + $0x980] sm:$0xff]  ;;  %681 = vmatpush.msrb.mxu3 %v164_v19  ;;  %v432_v11 = vld [vmem:[#allocation5 + $0x9e8] sm:$0xff]  ;;  %v1784_v12 = vld.sshfl [vmem:[#allocation1 + $0x28] sm:$0xff pattern:$0x73625140] }
  0x66   :  { %v483_v18 = vld [vmem:[#allocation5 + $0xb80] sm:$0xff]  ;;  %699 = vmatpush.msra.mxu2 %v236_v16  ;;  %621 = vmatpush.msrb.mxu0 %v419_v17  ;;  %v180_v13 = vld [vmem:[#allocation5 + $0x208] sm:$0xff] }
  0x67   :  { %v415_v22 = vld [vmem:[#allocation5 + $0x960] sm:$0xff]  ;;  %641 = vmatpush.msrb.mxu1 %v483_v18  ;;  %682 = vmatpush.msrb.mxu3 %v160_v24  ;;  %v364_v16 = vld [vmem:[#allocation5 + $0x7c8] sm:$0xff] }
  0x68   :  { %v479_v23 = vld [vmem:[#allocation5 + $0xb60] sm:$0xff]  ;;  %700 = vmatpush.msra.mxu2 %v232_v21  ;;  %622 = vmatpush.msrb.mxu0 %v415_v22  ;;  %v428_v17 = vld [vmem:[#allocation5 + $0x9c8] sm:$0xff] }
  0x69   :  { %v411_v26 = vld [vmem:[#allocation5 + $0x940] sm:$0xff]  ;;  %642 = vmatpush.msrb.mxu1 %v479_v23  ;;  %683 = vmatpush.msrb.mxu3 %v156_v28  ;;  %v304_v18 = vld [vmem:[#allocation5 + $0x5e8] sm:$0xff] }
  0x6a   :  { %v475_v27 = vld [vmem:[#allocation5 + $0xb40] sm:$0xff]  ;;  %701 = vmatpush.msra.mxu2 %v228_v25  ;;  %623 = vmatpush.msrb.mxu0 %v411_v26  ;;  %v496_v19 = vld [vmem:[#allocation5 + $0xbe8] sm:$0xff] }
  0x6b   :  { %v407_v31 = vld [vmem:[#allocation5 + $0x920] sm:$0xff]  ;;  %643 = vmatpush.msrb.mxu1 %v475_v27  ;;  %684 = vmatpush.msrb.mxu3 %v152_v33  ;;  %v360_v21 = vld [vmem:[#allocation5 + $0x7a8] sm:$0xff] }
  0x6c   :  { %v471_v32 = vld [vmem:[#allocation5 + $0xb20] sm:$0xff]  ;;  %702 = vmatpush.msra.mxu2 %v224_v30  ;;  %624 = vmatpush.msrb.mxu0 %v407_v31  ;;  %v424_v22 = vld [vmem:[#allocation5 + $0x9a8] sm:$0xff] }
  0x6d   :  { %v403_v35 = vld [vmem:[#allocation5 + $0x900] sm:$0xff]  ;;  %644 = vmatpush.msrb.mxu1 %v471_v32  ;;  %685 = vmatpush.msrb.mxu3 %v148_v37  ;;  %v300_v23 = vld [vmem:[#allocation5 + $0x5c8] sm:$0xff] }
  0x6e   :  { %v467_v36 = vld [vmem:[#allocation5 + $0xb00] sm:$0xff]  ;;  %703 = vmatpush.msra.mxu2 %v220_v34  ;;  %625 = vmatpush.msrb.mxu0 %v403_v35  ;;  %v492_v24 = vld [vmem:[#allocation5 + $0xbc8] sm:$0xff] }
  0x6f   :  { %v399_v39 = vld [vmem:[#allocation5 + $0x8e0] sm:$0xff]  ;;  %645 = vmatpush.msrb.mxu1 %v467_v36  ;;  %686 = vmatpush.msrb.mxu3 %v144_v41  ;;  %v356_v25 = vld [vmem:[#allocation5 + $0x788] sm:$0xff] }
  0x70   :  { %v463_v40 = vld [vmem:[#allocation5 + $0xae0] sm:$0xff]  ;;  %704 = vmatpush.msra.mxu2 %v216_v38  ;;  %626 = vmatpush.msrb.mxu0 %v399_v39  ;;  %v420_v26 = vld [vmem:[#allocation5 + $0x988] sm:$0xff] }
  0x71   :  { %v395_v43 = vld [vmem:[#allocation5 + $0x8c0] sm:$0xff]  ;;  %646 = vmatpush.msrb.mxu1 %v463_v40  ;;  %687 = vmatpush.msrb.mxu3 %v140_v45  ;;  %v296_v27 = vld [vmem:[#allocation5 + $0x5a8] sm:$0xff] }
  0x72   :  { %v459_v44 = vld [vmem:[#allocation5 + $0xac0] sm:$0xff]  ;;  %705 = vmatpush.msra.mxu2 %v212_v42  ;;  %627 = vmatpush.msrb.mxu0 %v395_v43  ;;  %v488_v28 = vld [vmem:[#allocation5 + $0xba8] sm:$0xff] }
  0x73   :  { %v391_v47 = vld [vmem:[#allocation5 + $0x8a0] sm:$0xff]  ;;  %647 = vmatpush.msrb.mxu1 %v459_v44  ;;  %688 = vmatpush.msrb.mxu3 %v136_v49  ;;  %v416_v30 = vld [vmem:[#allocation5 + $0x968] sm:$0xff] }
  0x74   :  { %v455_v48 = vld [vmem:[#allocation5 + $0xaa0] sm:$0xff]  ;;  %706 = vmatpush.msra.mxu2 %v208_v46  ;;  %628 = vmatpush.msrb.mxu0 %v391_v47  ;;  %v292_v31 = vld [vmem:[#allocation5 + $0x588] sm:$0xff] }
  0x75   :  { %v387_v51 = vld [vmem:[#allocation5 + $0x880] sm:$0xff]  ;;  %648 = vmatpush.msrb.mxu1 %v455_v48  ;;  %689 = vmatpush.msrb.mxu3 %v132_v53  ;;  %v484_v32 = vld [vmem:[#allocation5 + $0xb88] sm:$0xff] }
  0x76   :  { %v451_v52 = vld [vmem:[#allocation5 + $0xa80] sm:$0xff]  ;;  %707 = vmatpush.msra.mxu2 %v204_v50  ;;  %629 = vmatpush.msrb.mxu0 %v387_v51  ;;  %v348_v33 = vld [vmem:[#allocation5 + $0x748] sm:$0xff] }
  0x77   :  { %v383_v55 = vld [vmem:[#allocation5 + $0x860] sm:$0xff]  ;;  %649 = vmatpush.msrb.mxu1 %v451_v52  ;;  %690 = vmatpush.msrb.mxu3 %v128_v57  ;;  %v412_v34 = vld [vmem:[#allocation5 + $0x948] sm:$0xff] }
  0x78   :  { %v447_v56 = vld [vmem:[#allocation5 + $0xa60] sm:$0xff]  ;;  %708 = vmatpush.msra.mxu2 %v200_v54  ;;  %630 = vmatpush.msrb.mxu0 %v383_v55  ;;  %v288_v35 = vld [vmem:[#allocation5 + $0x568] sm:$0xff] }
  0x79   :  { %v379_v59 = vld [vmem:[#allocation5 + $0x840] sm:$0xff]  ;;  %650 = vmatpush.msrb.mxu1 %v447_v56  ;;  %691 = vmatpush.msrb.mxu3 %v124_v61  ;;  %v480_v36 = vld [vmem:[#allocation5 + $0xb68] sm:$0xff] }
  0x7a   :  { %v443_v60 = vld [vmem:[#allocation5 + $0xa40] sm:$0xff]  ;;  %709 = vmatpush.msra.mxu2 %v196_v58  ;;  %631 = vmatpush.msrb.mxu0 %v379_v59  ;;  %v344_v37 = vld [vmem:[#allocation5 + $0x728] sm:$0xff] }
  0x7b   :  { %v375_v63 = vld [vmem:[#allocation5 + $0x820] sm:$0xff]  ;;  %651 = vmatpush.msrb.mxu1 %v443_v60  ;;  %692 = vmatpush.msrb.mxu3 %v120_v1  ;;  %v408_v38 = vld [vmem:[#allocation5 + $0x928] sm:$0xff] }
  0x7c   :  { %v439_v0 = vld [vmem:[#allocation5 + $0xa20] sm:$0xff]  ;;  %710 = vmatpush.msra.mxu2 %v192_v62  ;;  %632 = vmatpush.msrb.mxu0 %v375_v63  ;;  %v284_v39 = vld [vmem:[#allocation5 + $0x548] sm:$0xff] }
  0x7d   :  { %v1778_v2 = vld.sshfl [vmem:[#allocation1 + $0x30] sm:$0xff pattern:$0x73625140]  ;;  %652 = vmatpush.msrb.mxu1 %v439_v0  ;;  %693 = vmatpush.msrb.mxu3 %v116_v6  ;;  %v476_v40 = vld [vmem:[#allocation5 + $0xb48] sm:$0xff] }
  0x7e   :  { %v371_v3 = vld [vmem:[#allocation5 + $0x800] sm:$0xff]  ;;  %1496 = vmatmul.msk.f32.vlgmr.msrb.gmra.mxu2 %vm535_vm0, %v1778_v2  ;;  %v340_v41 = vld [vmem:[#allocation5 + $0x708] sm:$0xff]  ;;  %694 = vmatmul.f32.vlgmr.msrb.gmra.mxu3 %v1768_v14 }
  0x7f   :  { %v435_v5 = vld [vmem:[#allocation5 + $0xa00] sm:$0xff]  ;;  %633 = vmatpush.msrb.mxu0 %v371_v3  ;;  %711 = vmatpush.msra.mxu2 %v188_v4  ;;  %v404_v42 = vld [vmem:[#allocation5 + $0x908] sm:$0xff] }
  0x80   :  { %653 = vmatpush.msrb.mxu1 %v435_v5  ;;  %634 = vmatmul.f32.vlgmr.msrb.gmra.mxu0 %v1780_v7  ;;  %v280_v43 = vld [vmem:[#allocation5 + $0x528] sm:$0xff] }
  0x81   :  { %712 = vmatpush.msra.mxu2 %v184_v8  ;;  %758 = vmatpush.msra.mxu3 %v432_v11  ;;  %v472_v44 = vld [vmem:[#allocation5 + $0xb28] sm:$0xff] }
  0x82   :  { %738 = vmatpush.msra.mxu1 %v368_v10  ;;  %718 = vmatpush.msra.mxu0 %v304_v18  ;;  %v336_v45 = vld [vmem:[#allocation5 + $0x6e8] sm:$0xff] }
  0x83   :  { %654 = vmatmul.f32.vlgmr.msrb.gmra.mxu1 %v1784_v12  ;;  %713 = vmatpush.msra.mxu2 %v180_v13  ;;  %v400_v46 = vld [vmem:[#allocation5 + $0x8e8] sm:$0xff] }
  0x84   :  { %739 = vmatpush.msra.mxu1 %v364_v16  ;;  %759 = vmatpush.msra.mxu3 %v428_v17  ;;  %v276_v47 = vld [vmem:[#allocation5 + $0x508] sm:$0xff] }
  0x85   :  { %778 = vmatpush.msrb.mxu2 %v496_v19  ;;  %719 = vmatpush.msra.mxu0 %v300_v23  ;;  %v468_v48 = vld [vmem:[#allocation5 + $0xb08] sm:$0xff]  ;;  %v177_v19 = vld [vmem:[#allocation5 + $0x1f0] sm:$0xff] }
  0x86   :  { %740 = vmatpush.msra.mxu1 %v360_v21  ;;  %760 = vmatpush.msra.mxu3 %v424_v22  ;;  %v332_v49 = vld [vmem:[#allocation5 + $0x6c8] sm:$0xff]  ;;  %v241_v21 = vld [vmem:[#allocation5 + $0x3f0] sm:$0xff] }
  0x87   :  { %779 = vmatpush.msrb.mxu2 %v492_v24  ;;  %720 = vmatpush.msra.mxu0 %v296_v27  ;;  %v396_v50 = vld [vmem:[#allocation5 + $0x8c8] sm:$0xff]  ;;  %v173_v24 = vld [vmem:[#allocation5 + $0x1d0] sm:$0xff] }
  0x88   :  { %741 = vmatpush.msra.mxu1 %v356_v25  ;;  %761 = vmatpush.msra.mxu3 %v420_v26  ;;  %v272_v51 = vld [vmem:[#allocation5 + $0x4e8] sm:$0xff]  ;;  %v237_v25 = vld [vmem:[#allocation5 + $0x3d0] sm:$0xff] }
  0x89   :  { %780 = vmatpush.msrb.mxu2 %v488_v28  ;;  %721 = vmatpush.msra.mxu0 %v292_v31  ;;  %v464_v52 = vld [vmem:[#allocation5 + $0xae8] sm:$0xff]  ;;  %v369_v26 = vld [vmem:[#allocation5 + $0x7f0] sm:$0xff] }
  0x8a   :  { %742 = vmatpush.msra.mxu1 %v352_v29  ;;  %762 = vmatpush.msra.mxu3 %v416_v30  ;;  %v328_v53 = vld [vmem:[#allocation5 + $0x6a8] sm:$0xff]  ;;  %v169_v27 = vld [vmem:[#allocation5 + $0x1b0] sm:$0xff] }
  0x8b   :  { %781 = vmatpush.msrb.mxu2 %v484_v32  ;;  %722 = vmatpush.msra.mxu0 %v288_v35  ;;  %v392_v54 = vld [vmem:[#allocation5 + $0x8a8] sm:$0xff]  ;;  %v233_v28 = vld [vmem:[#allocation5 + $0x3b0] sm:$0xff] }
  0x8c   :  { %743 = vmatpush.msra.mxu1 %v348_v33  ;;  %763 = vmatpush.msra.mxu3 %v412_v34  ;;  %v268_v55 = vld [vmem:[#allocation5 + $0x4c8] sm:$0xff]  ;;  %v365_v30 = vld [vmem:[#allocation5 + $0x7d0] sm:$0xff] }
  0x8d   :  { %782 = vmatpush.msrb.mxu2 %v480_v36  ;;  %723 = vmatpush.msra.mxu0 %v284_v39  ;;  %v460_v56 = vld [vmem:[#allocation5 + $0xac8] sm:$0xff]  ;;  %v165_v31 = vld [vmem:[#allocation5 + $0x190] sm:$0xff] }
  0x8e   :  { %744 = vmatpush.msra.mxu1 %v344_v37  ;;  %764 = vmatpush.msra.mxu3 %v408_v38  ;;  %v324_v57 = vld [vmem:[#allocation5 + $0x688] sm:$0xff]  ;;  %v229_v32 = vld [vmem:[#allocation5 + $0x390] sm:$0xff] }
  0x8f   :  { %783 = vmatpush.msrb.mxu2 %v476_v40  ;;  %724 = vmatpush.msra.mxu0 %v280_v43  ;;  %v388_v58 = vld [vmem:[#allocation5 + $0x888] sm:$0xff]  ;;  %v361_v34 = vld [vmem:[#allocation5 + $0x7b0] sm:$0xff] }
  0x90   :  { %745 = vmatpush.msra.mxu1 %v340_v41  ;;  %765 = vmatpush.msra.mxu3 %v404_v42  ;;  %v264_v59 = vld [vmem:[#allocation5 + $0x4a8] sm:$0xff]  ;;  %v161_v35 = vld [vmem:[#allocation5 + $0x170] sm:$0xff] }
  0x91   :  { %784 = vmatpush.msrb.mxu2 %v472_v44  ;;  %725 = vmatpush.msra.mxu0 %v276_v47  ;;  %v456_v60 = vld [vmem:[#allocation5 + $0xaa8] sm:$0xff]  ;;  %v225_v36 = vld [vmem:[#allocation5 + $0x370] sm:$0xff] }
  0x92   :  { %746 = vmatpush.msra.mxu1 %v336_v45  ;;  %766 = vmatpush.msra.mxu3 %v400_v46  ;;  %v320_v61 = vld [vmem:[#allocation5 + $0x668] sm:$0xff]  ;;  %v305_v37 = vld [vmem:[#allocation5 + $0x5f0] sm:$0xff] }
  0x93   :  { %785 = vmatpush.msrb.mxu2 %v468_v48  ;;  %726 = vmatpush.msra.mxu0 %v272_v51  ;;  %v384_v62 = vld [vmem:[#allocation5 + $0x868] sm:$0xff]  ;;  %v357_v38 = vld [vmem:[#allocation5 + $0x790] sm:$0xff] }
  0x94   :  { %747 = vmatpush.msra.mxu1 %v332_v49  ;;  %767 = vmatpush.msra.mxu3 %v396_v50  ;;  %v260_v63 = vld [vmem:[#allocation5 + $0x488] sm:$0xff]  ;;  %v157_v39 = vld [vmem:[#allocation5 + $0x150] sm:$0xff] }
  0x95   :  { %786 = vmatpush.msrb.mxu2 %v464_v52  ;;  %727 = vmatpush.msra.mxu0 %v268_v55  ;;  %v452_v0 = vld [vmem:[#allocation5 + $0xa88] sm:$0xff]  ;;  %v221_v40 = vld [vmem:[#allocation5 + $0x350] sm:$0xff] }
  0x96   :  { %748 = vmatpush.msra.mxu1 %v328_v53  ;;  %768 = vmatpush.msra.mxu3 %v392_v54  ;;  %v316_v1 = vld [vmem:[#allocation5 + $0x648] sm:$0xff]  ;;  %v301_v41 = vld [vmem:[#allocation5 + $0x5d0] sm:$0xff] }
  0x97   :  { %787 = vmatpush.msrb.mxu2 %v460_v56  ;;  %728 = vmatpush.msra.mxu0 %v264_v59  ;;  %v380_v3 = vld [vmem:[#allocation5 + $0x848] sm:$0xff]  ;;  %v353_v42 = vld [vmem:[#allocation5 + $0x770] sm:$0xff] }
  0x98   :  { %749 = vmatpush.msra.mxu1 %v324_v57  ;;  %769 = vmatpush.msra.mxu3 %v388_v58  ;;  %v256_v4 = vld [vmem:[#allocation5 + $0x468] sm:$0xff]  ;;  %v153_v43 = vld [vmem:[#allocation5 + $0x130] sm:$0xff] }
  0x99   :  { %788 = vmatpush.msrb.mxu2 %v456_v60  ;;  %729 = vmatpush.msra.mxu0 %v260_v63  ;;  %v448_v5 = vld [vmem:[#allocation5 + $0xa68] sm:$0xff]  ;;  %v217_v44 = vld [vmem:[#allocation5 + $0x330] sm:$0xff] }
  0x9a   :  { %750 = vmatpush.msra.mxu1 %v320_v61  ;;  %770 = vmatpush.msra.mxu3 %v384_v62  ;;  %v312_v6 = vld [vmem:[#allocation5 + $0x628] sm:$0xff]  ;;  %v297_v45 = vld [vmem:[#allocation5 + $0x5b0] sm:$0xff] }
  0x9b   :  { %789 = vmatpush.msrb.mxu2 %v452_v0  ;;  %v376_v8 = vld [vmem:[#allocation5 + $0x828] sm:$0xff]  ;;  %730 = vmatpush.msra.mxu0 %v256_v4  ;;  %v349_v46 = vld [vmem:[#allocation5 + $0x750] sm:$0xff] }
  0x9c   :  { %714 = vmatmul.f32.vlgmr.msra.gmra.mxu2 %v1774_v20  ;;  %751 = vmatpush.msra.mxu1 %v316_v1  ;;  %v252_v10 = vld [vmem:[#allocation5 + $0x448] sm:$0xff]  ;;  %v149_v47 = vld [vmem:[#allocation5 + $0x110] sm:$0xff] }
  0x9d   :  { %771 = vmatpush.msra.mxu3 %v380_v3  ;;  %v444_v11 = vld [vmem:[#allocation5 + $0xa48] sm:$0xff]  ;;  %790 = vmatpush.msrb.mxu2 %v448_v5  ;;  %v213_v48 = vld [vmem:[#allocation5 + $0x310] sm:$0xff] }
  0x9e   :  { %v308_v13 = vld [vmem:[#allocation5 + $0x608] sm:$0xff]  ;;  %752 = vmatpush.msra.mxu1 %v312_v6  ;;  %731 = vmatpush.msra.mxu0 %v252_v10  ;;  %v293_v49 = vld [vmem:[#allocation5 + $0x590] sm:$0xff] }
  0x9f   :  { %v372_v16 = vld [vmem:[#allocation5 + $0x808] sm:$0xff]  ;;  %772 = vmatpush.msra.mxu3 %v376_v8  ;;  %791 = vmatpush.msrb.mxu2 %v444_v11  ;;  %v345_v50 = vld [vmem:[#allocation5 + $0x730] sm:$0xff] }
  0xa0   :  { %v248_v17 = vld [vmem:[#allocation5 + $0x428] sm:$0xff]  ;;  %753 = vmatpush.msra.mxu1 %v308_v13  ;;  %v145_v51 = vld [vmem:[#allocation5 + $0xf0] sm:$0xff] }
  0xa1   :  { %v440_v18 = vld [vmem:[#allocation5 + $0xa28] sm:$0xff]  ;;  %773 = vmatpush.msra.mxu3 %v372_v16  ;;  %732 = vmatpush.msra.mxu0 %v248_v17  ;;  %v209_v52 = vld [vmem:[#allocation5 + $0x2f0] sm:$0xff] }
  0xa2   :  { %v244_v22 = vld [vmem:[#allocation5 + $0x408] sm:$0xff]  ;;  %792 = vmatpush.msrb.mxu2 %v440_v18  ;;  %818 = vmatpush.msrb.mxu1 %v177_v19  ;;  %v289_v53 = vld [vmem:[#allocation5 + $0x570] sm:$0xff] }
  0xa3   :  { %v436_v23 = vld [vmem:[#allocation5 + $0xa08] sm:$0xff]  ;;  %838 = vmatpush.msrb.mxu3 %v241_v21  ;;  %733 = vmatpush.msra.mxu0 %v244_v22  ;;  %v341_v54 = vld [vmem:[#allocation5 + $0x710] sm:$0xff] }
  0xa4   :  { %774 = vmatmul.f32.vlgmr.msra.gmra.mxu3 %v1780_v7  ;;  %793 = vmatpush.msrb.mxu2 %v436_v23  ;;  %v504_v29 = vld [vmem:[#allocation5 + $0xc28] sm:$0xff]  ;;  %v141_v55 = vld [vmem:[#allocation5 + $0xd0] sm:$0xff] }
  0xa5   :  { %819 = vmatpush.msrb.mxu1 %v173_v24  ;;  %839 = vmatpush.msrb.mxu3 %v237_v25  ;;  %v500_v33 = vld [vmem:[#allocation5 + $0xc08] sm:$0xff]  ;;  %v205_v56 = vld [vmem:[#allocation5 + $0x2d0] sm:$0xff] }
  0xa6   :  { %734 = vmatmul.f32.vlgmr.msra.gmra.mxu0 %v1766_v9  ;;  %794 = vmatmul.f32.vlgmr.msrb.gmra.mxu2 %v1784_v12  ;;  %v285_v57 = vld [vmem:[#allocation5 + $0x550] sm:$0xff] }
  0xa7   :  { %878 = vmatpush.msra.mxu2 %v369_v26  ;;  %820 = vmatpush.msrb.mxu1 %v169_v27  ;;  %v337_v58 = vld [vmem:[#allocation5 + $0x6f0] sm:$0xff] }
  0xa8   :  { %840 = vmatpush.msrb.mxu3 %v233_v28  ;;  %754 = vmatmul.f32.vlgmr.msra.gmra.mxu1 %v1771_v15  ;;  %v137_v59 = vld [vmem:[#allocation5 + $0xb0] sm:$0xff] }
  0xa9   :  { %812 = vmatpush.msrb.mxu0 %v504_v29  ;;  %879 = vmatpush.msra.mxu2 %v365_v30  ;;  %v201_v60 = vld [vmem:[#allocation5 + $0x2b0] sm:$0xff] }
  0xaa   :  { %821 = vmatpush.msrb.mxu1 %v165_v31  ;;  %841 = vmatpush.msrb.mxu3 %v229_v32  ;;  %v281_v61 = vld [vmem:[#allocation5 + $0x530] sm:$0xff] }
  0xab   :  { %813 = vmatpush.msrb.mxu0 %v500_v33  ;;  %880 = vmatpush.msra.mxu2 %v361_v34  ;;  %v333_v62 = vld [vmem:[#allocation5 + $0x6d0] sm:$0xff]  ;;  %v178_v33 = vld [vmem:[#allocation5 + $0x1f8] sm:$0xff] }
  0xac   :  { %822 = vmatpush.msrb.mxu1 %v161_v35  ;;  %842 = vmatpush.msrb.mxu3 %v225_v36  ;;  %v133_v63 = vld [vmem:[#allocation5 + $0x90] sm:$0xff] }
  0xad   :  { %858 = vmatpush.msra.mxu0 %v305_v37  ;;  %881 = vmatpush.msra.mxu2 %v357_v38  ;;  %v197_v0 = vld [vmem:[#allocation5 + $0x290] sm:$0xff]  ;;  %v174_v37 = vld [vmem:[#allocation5 + $0x1d8] sm:$0xff] }
  0xae   :  { %823 = vmatpush.msrb.mxu1 %v157_v39  ;;  %843 = vmatpush.msrb.mxu3 %v221_v40  ;;  %v277_v1 = vld [vmem:[#allocation5 + $0x510] sm:$0xff] }
  0xaf   :  { %859 = vmatpush.msra.mxu0 %v301_v41  ;;  %882 = vmatpush.msra.mxu2 %v353_v42  ;;  %v329_v3 = vld [vmem:[#allocation5 + $0x6b0] sm:$0xff]  ;;  %v170_v41 = vld [vmem:[#allocation5 + $0x1b8] sm:$0xff] }
  0xb0   :  { %1497 = vmatmul.msk.f32.vlgmr.msrb.gmra.mxu0 %vm535_vm0, %v1778_v2  ;;  %824 = vmatpush.msrb.mxu1 %v153_v43  ;;  %v129_v4 = vld [vmem:[#allocation5 + $0x70] sm:$0xff] }
  0xb1   :  { %844 = vmatpush.msrb.mxu3 %v217_v44  ;;  %860 = vmatpush.msra.mxu0 %v297_v45  ;;  %v193_v5 = vld [vmem:[#allocation5 + $0x270] sm:$0xff]  ;;  %v166_v45 = vld [vmem:[#allocation5 + $0x198] sm:$0xff] }
  0xb2   :  { %883 = vmatpush.msra.mxu2 %v349_v46  ;;  %825 = vmatpush.msrb.mxu1 %v149_v47  ;;  %v273_v6 = vld [vmem:[#allocation5 + $0x4f0] sm:$0xff] }
  0xb3   :  { %845 = vmatpush.msrb.mxu3 %v213_v48  ;;  %861 = vmatpush.msra.mxu0 %v293_v49  ;;  %v325_v8 = vld [vmem:[#allocation5 + $0x690] sm:$0xff]  ;;  %v162_v49 = vld [vmem:[#allocation5 + $0x178] sm:$0xff] }
  0xb4   :  { %884 = vmatpush.msra.mxu2 %v345_v50  ;;  %826 = vmatpush.msrb.mxu1 %v145_v51  ;;  %v125_v10 = vld [vmem:[#allocation5 + $0x50] sm:$0xff]  ;;  %v242_v50 = vld [vmem:[#allocation5 + $0x3f8] sm:$0xff] }
  0xb5   :  { %846 = vmatpush.msrb.mxu3 %v209_v52  ;;  %862 = vmatpush.msra.mxu0 %v289_v53  ;;  %v189_v11 = vld [vmem:[#allocation5 + $0x250] sm:$0xff]  ;;  %v238_v53 = vld [vmem:[#allocation5 + $0x3d8] sm:$0xff] }
  0xb6   :  { %885 = vmatpush.msra.mxu2 %v341_v54  ;;  %827 = vmatpush.msrb.mxu1 %v141_v55  ;;  %v269_v13 = vld [vmem:[#allocation5 + $0x4d0] sm:$0xff] }
  0xb7   :  { %847 = vmatpush.msrb.mxu3 %v205_v56  ;;  %863 = vmatpush.msra.mxu0 %v285_v57  ;;  %v321_v16 = vld [vmem:[#allocation5 + $0x670] sm:$0xff]  ;;  %v154_v56 = vld [vmem:[#allocation5 + $0x138] sm:$0xff] }
  0xb8   :  { %886 = vmatpush.msra.mxu2 %v337_v58  ;;  %828 = vmatpush.msrb.mxu1 %v137_v59  ;;  %v121_v17 = vld [vmem:[#allocation5 + $0x30] sm:$0xff]  ;;  %v234_v57 = vld [vmem:[#allocation5 + $0x3b8] sm:$0xff] }
  0xb9   :  { %848 = vmatpush.msrb.mxu3 %v201_v60  ;;  %864 = vmatpush.msra.mxu0 %v281_v61  ;;  %v185_v18 = vld [vmem:[#allocation5 + $0x230] sm:$0xff]  ;;  %v150_v59 = vld [vmem:[#allocation5 + $0x118] sm:$0xff] }
  0xba   :  { %887 = vmatpush.msra.mxu2 %v333_v62  ;;  %829 = vmatpush.msrb.mxu1 %v133_v63  ;;  %v265_v19 = vld [vmem:[#allocation5 + $0x4b0] sm:$0xff]  ;;  %v146_v61 = vld [vmem:[#allocation5 + $0xf8] sm:$0xff] }
  0xbb   :  { %849 = vmatpush.msrb.mxu3 %v197_v0  ;;  %865 = vmatpush.msra.mxu0 %v277_v1  ;;  %v317_v21 = vld [vmem:[#allocation5 + $0x650] sm:$0xff]  ;;  %v226_v62 = vld [vmem:[#allocation5 + $0x378] sm:$0xff] }
  0xbc   :  { %888 = vmatpush.msra.mxu2 %v329_v3  ;;  %830 = vmatpush.msrb.mxu1 %v129_v4  ;;  %v117_v22 = vld [vmem:[#allocation5 + $0x10] sm:$0xff]  ;;  %v142_v1 = vld [vmem:[#allocation5 + $0xd8] sm:$0xff] }
  0xbd   :  { %850 = vmatpush.msrb.mxu3 %v193_v5  ;;  %866 = vmatpush.msra.mxu0 %v273_v6  ;;  %v181_v23 = vld [vmem:[#allocation5 + $0x210] sm:$0xff]  ;;  %v222_v3 = vld [vmem:[#allocation5 + $0x358] sm:$0xff] }
  0xbe   :  { %889 = vmatpush.msra.mxu2 %v325_v8  ;;  %831 = vmatpush.msrb.mxu1 %v125_v10  ;;  %v261_v24 = vld [vmem:[#allocation5 + $0x490] sm:$0xff]  ;;  %v138_v6 = vld [vmem:[#allocation5 + $0xb8] sm:$0xff] }
  0xbf   :  { %851 = vmatpush.msrb.mxu3 %v189_v11  ;;  %867 = vmatpush.msra.mxu0 %v269_v13  ;;  %v313_v25 = vld [vmem:[#allocation5 + $0x630] sm:$0xff]  ;;  %v218_v8 = vld [vmem:[#allocation5 + $0x338] sm:$0xff] }
  0xc0   :  { %890 = vmatpush.msra.mxu2 %v321_v16  ;;  %832 = vmatpush.msrb.mxu1 %v121_v17  ;;  %v433_v26 = vld [vmem:[#allocation5 + $0x9f0] sm:$0xff]  ;;  %v134_v13 = vld [vmem:[#allocation5 + $0x98] sm:$0xff] }
  0xc1   :  { %852 = vmatpush.msrb.mxu3 %v185_v18  ;;  %868 = vmatpush.msra.mxu0 %v265_v19  ;;  %v497_v27 = vld [vmem:[#allocation5 + $0xbf0] sm:$0xff]  ;;  %v214_v16 = vld [vmem:[#allocation5 + $0x318] sm:$0xff] }
  0xc2   :  { %891 = vmatpush.msra.mxu2 %v317_v21  ;;  %833 = vmatpush.msrb.mxu1 %v117_v22  ;;  %v257_v28 = vld [vmem:[#allocation5 + $0x470] sm:$0xff]  ;;  %v130_v19 = vld [vmem:[#allocation5 + $0x78] sm:$0xff] }
  0xc3   :  { %853 = vmatpush.msrb.mxu3 %v181_v23  ;;  %869 = vmatpush.msra.mxu0 %v261_v24  ;;  %v309_v29 = vld [vmem:[#allocation5 + $0x610] sm:$0xff]  ;;  %v210_v21 = vld [vmem:[#allocation5 + $0x2f8] sm:$0xff] }
  0xc4   :  { %v429_v30 = vld [vmem:[#allocation5 + $0x9d0] sm:$0xff]  ;;  %892 = vmatpush.msra.mxu2 %v313_v25  ;;  %898 = vmatpush.msra.mxu1 %v433_v26  ;;  %v126_v24 = vld [vmem:[#allocation5 + $0x58] sm:$0xff] }
  0xc5   :  { %v493_v31 = vld [vmem:[#allocation5 + $0xbd0] sm:$0xff]  ;;  %918 = vmatpush.msra.mxu3 %v497_v27  ;;  %870 = vmatpush.msra.mxu0 %v257_v28  ;;  %v206_v25 = vld [vmem:[#allocation5 + $0x2d8] sm:$0xff] }
  0xc6   :  { %v253_v32 = vld [vmem:[#allocation5 + $0x450] sm:$0xff]  ;;  %893 = vmatpush.msra.mxu2 %v309_v29  ;;  %899 = vmatpush.msra.mxu1 %v429_v30  ;;  %v122_v28 = vld [vmem:[#allocation5 + $0x38] sm:$0xff] }
  0xc7   :  { %v425_v34 = vld [vmem:[#allocation5 + $0x9b0] sm:$0xff]  ;;  %919 = vmatpush.msra.mxu3 %v493_v31  ;;  %871 = vmatpush.msra.mxu0 %v253_v32  ;;  %v202_v29 = vld [vmem:[#allocation5 + $0x2b8] sm:$0xff] }
  0xc8   :  { %v489_v35 = vld [vmem:[#allocation5 + $0xbb0] sm:$0xff]  ;;  %958 = vmatpush.msrb.mxu2 %v178_v33  ;;  %900 = vmatpush.msra.mxu1 %v425_v34  ;;  %v306_v30 = vld [vmem:[#allocation5 + $0x5f8] sm:$0xff] }
  0xc9   :  { %v249_v36 = vld [vmem:[#allocation5 + $0x430] sm:$0xff]  ;;  %920 = vmatpush.msra.mxu3 %v489_v35  ;;  %834 = vmatmul.f32.vlgmr.msrb.gmra.mxu1 %v1768_v14  ;;  %v370_v31 = vld [vmem:[#allocation5 + $0x7f8] sm:$0xff] }
  0xca   :  { %v421_v38 = vld [vmem:[#allocation5 + $0x990] sm:$0xff]  ;;  %872 = vmatpush.msra.mxu0 %v249_v36  ;;  %959 = vmatpush.msrb.mxu2 %v174_v37  ;;  %v118_v32 = vld [vmem:[#allocation5 + $0x18] sm:$0xff] }
  0xcb   :  { %v485_v39 = vld [vmem:[#allocation5 + $0xb90] sm:$0xff]  ;;  %901 = vmatpush.msra.mxu1 %v421_v38  ;;  %854 = vmatmul.f32.vlgmr.msrb.gmra.mxu3 %v1774_v20  ;;  %v158_v20 = vld [vmem:[#allocation5 + $0x158] sm:$0xff] }
  0xcc   :  { %v245_v40 = vld [vmem:[#allocation5 + $0x410] sm:$0xff]  ;;  %921 = vmatpush.msra.mxu3 %v485_v39  ;;  %960 = vmatpush.msrb.mxu2 %v170_v41  ;;  %v198_v33 = vld [vmem:[#allocation5 + $0x298] sm:$0xff] }
  0xcd   :  { %v417_v42 = vld [vmem:[#allocation5 + $0x970] sm:$0xff]  ;;  %873 = vmatpush.msra.mxu0 %v245_v40  ;;  %894 = vmatmul.f32.vlgmr.msra.gmra.mxu2 %v1771_v15  ;;  %v302_v34 = vld [vmem:[#allocation5 + $0x5d8] sm:$0xff] }
  0xce   :  { %v481_v43 = vld [vmem:[#allocation5 + $0xb70] sm:$0xff]  ;;  %902 = vmatpush.msra.mxu1 %v417_v42  ;;  %961 = vmatpush.msrb.mxu2 %v166_v45  ;;  %v366_v35 = vld [vmem:[#allocation5 + $0x7d8] sm:$0xff] }
  0xcf   :  { %v505_v44 = vld [vmem:[#allocation5 + $0xc30] sm:$0xff]  ;;  %922 = vmatpush.msra.mxu3 %v481_v43  ;;  %874 = vmatmul.f32.vlgmr.msra.gmra.mxu0 %v1766_v9  ;;  %v230_v9 = vld [vmem:[#allocation5 + $0x398] sm:$0xff] }
  0xd0   :  { %v413_v46 = vld [vmem:[#allocation5 + $0x950] sm:$0xff]  ;;  %952 = vmatpush.msrb.mxu0 %v505_v44  ;;  %962 = vmatpush.msrb.mxu2 %v162_v49  ;;  %v434_v36 = vld [vmem:[#allocation5 + $0x9f8] sm:$0xff] }
  0xd1   :  { %v477_v47 = vld [vmem:[#allocation5 + $0xb50] sm:$0xff]  ;;  %903 = vmatpush.msra.mxu1 %v413_v46  ;;  %v194_v37 = vld [vmem:[#allocation5 + $0x278] sm:$0xff] }
  0xd2   :  { %v501_v48 = vld [vmem:[#allocation5 + $0xc10] sm:$0xff]  ;;  %923 = vmatpush.msra.mxu3 %v477_v47  ;;  %963 = vmatpush.msrb.mxu2 %v158_v20  ;;  %v298_v38 = vld [vmem:[#allocation5 + $0x5b8] sm:$0xff] }
  0xd3   :  { %953 = vmatpush.msrb.mxu0 %v501_v48  ;;  %v409_v51 = vld [vmem:[#allocation5 + $0x930] sm:$0xff]  ;;  %v362_v39 = vld [vmem:[#allocation5 + $0x7b8] sm:$0xff] }
  0xd4   :  { %v473_v52 = vld [vmem:[#allocation5 + $0xb30] sm:$0xff]  ;;  %904 = vmatpush.msra.mxu1 %v409_v51  ;;  %964 = vmatpush.msrb.mxu2 %v154_v56  ;;  %v430_v40 = vld [vmem:[#allocation5 + $0x9d8] sm:$0xff] }
  0xd5   :  { %978 = vmatpush.msra.mxu0 %v242_v50  ;;  %v405_v54 = vld [vmem:[#allocation5 + $0x910] sm:$0xff]  ;;  %924 = vmatpush.msra.mxu3 %v473_v52  ;;  %v358_v41 = vld [vmem:[#allocation5 + $0x798] sm:$0xff] }
  0xd6   :  { %v469_v55 = vld [vmem:[#allocation5 + $0xb10] sm:$0xff]  ;;  %905 = vmatpush.msra.mxu1 %v405_v54  ;;  %965 = vmatpush.msrb.mxu2 %v150_v59  ;;  %v426_v42 = vld [vmem:[#allocation5 + $0x9b8] sm:$0xff] }
  0xd7   :  { %979 = vmatpush.msra.mxu0 %v238_v53  ;;  %v401_v58 = vld [vmem:[#allocation5 + $0x8f0] sm:$0xff]  ;;  %925 = vmatpush.msra.mxu3 %v469_v55  ;;  %v186_v43 = vld [vmem:[#allocation5 + $0x238] sm:$0xff] }
  0xd8   :  { %v465_v14 = vld [vmem:[#allocation5 + $0xaf0] sm:$0xff]  ;;  %906 = vmatpush.msra.mxu1 %v401_v58  ;;  %966 = vmatpush.msrb.mxu2 %v146_v61  ;;  %v290_v44 = vld [vmem:[#allocation5 + $0x578] sm:$0xff] }
  0xd9   :  { %980 = vmatpush.msra.mxu0 %v234_v57  ;;  %v397_v15 = vld [vmem:[#allocation5 + $0x8d0] sm:$0xff]  ;;  %926 = vmatpush.msra.mxu3 %v465_v14  ;;  %v354_v45 = vld [vmem:[#allocation5 + $0x778] sm:$0xff] }
  0xda   :  { %v461_v60 = vld [vmem:[#allocation5 + $0xad0] sm:$0xff]  ;;  %907 = vmatpush.msra.mxu1 %v397_v15  ;;  %967 = vmatpush.msrb.mxu2 %v142_v1  ;;  %v422_v46 = vld [vmem:[#allocation5 + $0x998] sm:$0xff] }
  0xdb   :  { %981 = vmatpush.msra.mxu0 %v230_v9  ;;  %v393_v63 = vld [vmem:[#allocation5 + $0x8b0] sm:$0xff]  ;;  %927 = vmatpush.msra.mxu3 %v461_v60  ;;  %v182_v47 = vld [vmem:[#allocation5 + $0x218] sm:$0xff] }
  0xdc   :  { %v457_v0 = vld [vmem:[#allocation5 + $0xab0] sm:$0xff]  ;;  %908 = vmatpush.msra.mxu1 %v393_v63  ;;  %968 = vmatpush.msrb.mxu2 %v138_v6  ;;  %v286_v48 = vld [vmem:[#allocation5 + $0x558] sm:$0xff] }
  0xdd   :  { %982 = vmatpush.msra.mxu0 %v226_v62  ;;  %v389_v4 = vld [vmem:[#allocation5 + $0x890] sm:$0xff]  ;;  %928 = vmatpush.msra.mxu3 %v457_v0  ;;  %v350_v49 = vld [vmem:[#allocation5 + $0x758] sm:$0xff] }
  0xde   :  { %v453_v5 = vld [vmem:[#allocation5 + $0xa90] sm:$0xff]  ;;  %909 = vmatpush.msra.mxu1 %v389_v4  ;;  %969 = vmatpush.msrb.mxu2 %v134_v13  ;;  %v418_v50 = vld [vmem:[#allocation5 + $0x978] sm:$0xff] }
  0xdf   :  { %983 = vmatpush.msra.mxu0 %v222_v3  ;;  %v385_v10 = vld [vmem:[#allocation5 + $0x870] sm:$0xff]  ;;  %929 = vmatpush.msra.mxu3 %v453_v5  ;;  %v498_v51 = vld [vmem:[#allocation5 + $0xbf8] sm:$0xff] }
  0xe0   :  { %v449_v11 = vld [vmem:[#allocation5 + $0xa70] sm:$0xff]  ;;  %910 = vmatpush.msra.mxu1 %v385_v10  ;;  %970 = vmatpush.msrb.mxu2 %v130_v19  ;;  %v282_v52 = vld [vmem:[#allocation5 + $0x538] sm:$0xff] }
  0xe1   :  { %984 = vmatpush.msra.mxu0 %v218_v8  ;;  %v381_v17 = vld [vmem:[#allocation5 + $0x850] sm:$0xff]  ;;  %930 = vmatpush.msra.mxu3 %v449_v11  ;;  %v346_v20 = vld [vmem:[#allocation5 + $0x738] sm:$0xff] }
  0xe2   :  { %v445_v18 = vld [vmem:[#allocation5 + $0xa50] sm:$0xff]  ;;  %911 = vmatpush.msra.mxu1 %v381_v17  ;;  %971 = vmatpush.msrb.mxu2 %v126_v24  ;;  %v414_v53 = vld [vmem:[#allocation5 + $0x958] sm:$0xff] }
  0xe3   :  { %985 = vmatpush.msra.mxu0 %v214_v16  ;;  %v377_v22 = vld [vmem:[#allocation5 + $0x830] sm:$0xff]  ;;  %931 = vmatpush.msra.mxu3 %v445_v18  ;;  %v494_v54 = vld [vmem:[#allocation5 + $0xbd8] sm:$0xff] }
  0xe4   :  { %v441_v23 = vld [vmem:[#allocation5 + $0xa30] sm:$0xff]  ;;  %912 = vmatpush.msra.mxu1 %v377_v22  ;;  %972 = vmatpush.msrb.mxu2 %v122_v28  ;;  %v278_v55 = vld [vmem:[#allocation5 + $0x518] sm:$0xff] }
  0xe5   :  { %986 = vmatpush.msra.mxu0 %v210_v21  ;;  %v373_v26 = vld [vmem:[#allocation5 + $0x810] sm:$0xff]  ;;  %932 = vmatpush.msra.mxu3 %v441_v23  ;;  %v410_v56 = vld [vmem:[#allocation5 + $0x938] sm:$0xff] }
  0xe6   :  { %v437_v27 = vld [vmem:[#allocation5 + $0xa10] sm:$0xff]  ;;  %913 = vmatpush.msra.mxu1 %v373_v26  ;;  %973 = vmatpush.msrb.mxu2 %v118_v32  ;;  %v490_v57 = vld [vmem:[#allocation5 + $0xbb8] sm:$0xff] }
  0xe7   :  { %987 = vmatpush.msra.mxu0 %v206_v25  ;;  %933 = vmatpush.msra.mxu3 %v437_v27  ;;  %v274_v58 = vld [vmem:[#allocation5 + $0x4f8] sm:$0xff]  ;;  %v1512_v22 = vld.sshfl [vmem:[#allocation1] sm:$0xff pattern:$0x73625140] }
  0xe8   :  { %914 = vmatmul.f32.vlgmr.msra.gmra.mxu1 %v1780_v7  ;;  %934 = vmatmul.f32.vlgmr.msra.gmra.mxu3 %v1784_v12  ;;  %v190_v7 = vld [vmem:[#allocation5 + $0x258] sm:$0xff] }
  0xe9   :  { %988 = vmatpush.msra.mxu0 %v202_v29  ;;  %998 = vmatpush.msrb.mxu1 %v306_v30  ;;  %v294_v12 = vld [vmem:[#allocation5 + $0x598] sm:$0xff] }
  0xea   :  { %1018 = vmatpush.msrb.mxu3 %v370_v31  ;;  %1038 = vmatpush.msra.mxu2 %v434_v36  ;;  %v338_v14 = vld [vmem:[#allocation5 + $0x6f8] sm:$0xff]  ;;  %v1804_v31 = vld [vmem:[#allocation7] sm:$0xf]  ;;  %v1130_v36 = vld [vmem:[#allocation8 + $0xe0] sm:$0xff] }
  0xeb   :  { %989 = vmatpush.msra.mxu0 %v198_v33  ;;  %999 = vmatpush.msrb.mxu1 %v302_v34  ;;  %v406_v59 = vld [vmem:[#allocation5 + $0x918] sm:$0xff] }
  0xec   :  { %1019 = vmatpush.msrb.mxu3 %v366_v35  ;;  %1039 = vmatpush.msra.mxu2 %v430_v40  ;;  %v486_v9 = vld [vmem:[#allocation5 + $0xb98] sm:$0xff]  ;;  %v1513_v40 = vld.sshfl [vmem:[#allocation1 + $0x18] sm:$0xff pattern:$0x73625140] }
  0xed   :  { %990 = vmatpush.msra.mxu0 %v194_v37  ;;  %1000 = vmatpush.msrb.mxu1 %v298_v38  ;;  %v270_v15 = vld [vmem:[#allocation5 + $0x4d8] sm:$0xff]  ;;  %v509_v37 = vperm.slane %v1804_v31, 0  ;;  %v1162_v38 = vld [vmem:[#allocation8 + $0x1e0] sm:$0xff] }
  0xee   :  { %1020 = vmatpush.msrb.mxu3 %v362_v39  ;;  %1040 = vmatpush.msra.mxu2 %v426_v42  ;;  %v334_v60 = vld [vmem:[#allocation5 + $0x6d8] sm:$0xff]  ;;  %v555_v39 = vpop.f32.mrf.mxu0 }
  0xef   :  { %991 = vmatpush.msra.mxu0 %v190_v7  ;;  %1001 = vmatpush.msrb.mxu1 %v294_v12  ;;  %v402_v61 = vld [vmem:[#allocation5 + $0x8f8] sm:$0xff] }
  0xf0   :  { %1021 = vmatpush.msrb.mxu3 %v358_v41  ;;  %1498 = vmatmul.msk.f32.vlgmr.msrb.gmra.mxu0 %vm535_vm0, %v1778_v2  ;;  %v342_v2 = vld [vmem:[#allocation5 + $0x718] sm:$0xff] }
  0xf1   :  { %992 = vmatpush.msra.mxu0 %v186_v43  ;;  %1002 = vmatpush.msrb.mxu1 %v290_v44  ;;  %v482_v62 = vld [vmem:[#allocation5 + $0xb78] sm:$0xff] }
  0xf2   :  { %1022 = vmatpush.msrb.mxu3 %v354_v45  ;;  %1041 = vmatpush.msra.mxu2 %v422_v46  ;;  %v266_v63 = vld [vmem:[#allocation5 + $0x4b8] sm:$0xff]  ;;  %v556_v45 = vadd.f32 %v555_v39, %v509_v37  ;;  %v1515_v46 = vld.sshfl [vmem:[#allocation1 + $0x20] sm:$0xff pattern:$0x73625140] }
  0xf3   :  { %993 = vmatpush.msra.mxu0 %v182_v47  ;;  %1003 = vmatpush.msrb.mxu1 %v286_v48  ;;  %v330_v0 = vld [vmem:[#allocation5 + $0x6b8] sm:$0xff]  ;;  %v1126_v47 = vld [vmem:[#allocation8 + $0xc0] sm:$0xff]  ;;  %v575_v48 = vpop.f32.mrf.mxu1 }
  0xf4   :  { %1023 = vmatpush.msrb.mxu3 %v350_v49  ;;  %1042 = vmatpush.msra.mxu2 %v418_v50  ;;  %v398_v1 = vld [vmem:[#allocation5 + $0x8d8] sm:$0xff]  ;;  %v1158_v49 = vld [vmem:[#allocation8 + $0x1c0] sm:$0xff] }
  0xf5   :  { %1058 = vmatpush.msrb.mxu0 %v498_v51  ;;  %1004 = vmatpush.msrb.mxu1 %v282_v52  ;;  %v478_v3 = vld [vmem:[#allocation5 + $0xb58] sm:$0xff]  ;;  %v595_v51 = vpop.f32.mrf.mxu2  ;;  %v1102_v39 = vld [vmem:[#allocation8] sm:$0xff] }
  0xf6   :  { %1024 = vmatpush.msrb.mxu3 %v346_v20  ;;  %1043 = vmatpush.msra.mxu2 %v414_v53  ;;  %v262_v4 = vld [vmem:[#allocation5 + $0x498] sm:$0xff] }
  0xf7   :  { %1059 = vmatpush.msrb.mxu0 %v494_v54  ;;  %1005 = vmatpush.msrb.mxu1 %v278_v55  ;;  %v326_v5 = vld [vmem:[#allocation5 + $0x698] sm:$0xff]  ;;  %v576_v55 = vadd.f32 %v575_v48, %v556_v45  ;;  %v1163_v48 = vld [vmem:[#allocation8 + $0x1e8] sm:$0xff] }
  0xf8   :  { %1025 = vmatpush.msrb.mxu3 %v342_v2  ;;  %1044 = vmatpush.msra.mxu2 %v410_v56  ;;  %v394_v6 = vld [vmem:[#allocation5 + $0x8b8] sm:$0xff]  ;;  %v1122_v56 = vld [vmem:[#allocation8 + $0xa0] sm:$0xff] }
  0xf9   :  { %1060 = vmatpush.msrb.mxu0 %v490_v57  ;;  %1006 = vmatpush.msrb.mxu1 %v274_v58  ;;  %v474_v8 = vld [vmem:[#allocation5 + $0xb38] sm:$0xff]  ;;  %v1154_v57 = vld [vmem:[#allocation8 + $0x1a0] sm:$0xff] }
  0xfa   :  { %1026 = vmatpush.msrb.mxu3 %v338_v14  ;;  %1045 = vmatpush.msra.mxu2 %v406_v59  ;;  %v258_v10 = vld [vmem:[#allocation5 + $0x478] sm:$0xff]  ;;  %v615_v14 = vpop.f32.mrf.mxu3 }
  0xfb   :  { %1061 = vmatpush.msrb.mxu0 %v486_v9  ;;  %1007 = vmatpush.msrb.mxu1 %v270_v15  ;;  %v322_v11 = vld [vmem:[#allocation5 + $0x678] sm:$0xff]  ;;  %v596_v9 = vadd.f32 %v595_v51, %v576_v55  ;;  %v1127_v55 = vld [vmem:[#allocation8 + $0xc8] sm:$0xff] }
  0xfc   :  { %1027 = vmatpush.msrb.mxu3 %v334_v60  ;;  %1046 = vmatpush.msra.mxu2 %v402_v61  ;;  %v390_v13 = vld [vmem:[#allocation5 + $0x898] sm:$0xff]  ;;  %v1118_v60 = vld [vmem:[#allocation8 + $0x80] sm:$0xff] }
  0xfd   :  { %1062 = vmatpush.msrb.mxu0 %v482_v62  ;;  %1008 = vmatpush.msrb.mxu1 %v266_v63  ;;  %v470_v16 = vld [vmem:[#allocation5 + $0xb18] sm:$0xff]  ;;  %v1150_v62 = vld [vmem:[#allocation8 + $0x180] sm:$0xff] }
  0xfe   :  { %1028 = vmatpush.msrb.mxu3 %v330_v0  ;;  %1047 = vmatpush.msra.mxu2 %v398_v1  ;;  %v254_v17 = vld [vmem:[#allocation5 + $0x458] sm:$0xff]  ;;  %v635_v1 = vpop.f32.mrf.mxu0 }
  0xff   :  { %1063 = vmatpush.msrb.mxu0 %v478_v3  ;;  %1009 = vmatpush.msrb.mxu1 %v262_v4  ;;  %v318_v18 = vld [vmem:[#allocation5 + $0x658] sm:$0xff]  ;;  %v616_v4 = vadd.f32 %v615_v14, %v596_v9 }
 0x100   :  { %1029 = vmatpush.msrb.mxu3 %v326_v5  ;;  %1048 = vmatpush.msra.mxu2 %v394_v6  ;;  %v386_v19 = vld [vmem:[#allocation5 + $0x878] sm:$0xff]  ;;  %v1114_v5 = vld [vmem:[#allocation8 + $0x60] sm:$0xff]  ;;  %v510_v6 = vperm.slane %v1804_v31, 1 }
 0x101   :  { %1064 = vmatpush.msrb.mxu0 %v474_v8  ;;  %1010 = vmatpush.msrb.mxu1 %v258_v10  ;;  %v466_v21 = vld [vmem:[#allocation5 + $0xaf8] sm:$0xff]  ;;  %v675_v63 = vpop.f32.mrf.mxu2  ;;  %v1146_v8 = vld [vmem:[#allocation8 + $0x160] sm:$0xff]  ;;  %v636_v10 = vadd.f32 %v635_v1, %v616_v4  ;;  %v1151_v4 = vld [vmem:[#allocation8 + $0x188] sm:$0xff] }
 0x102   :  { %1030 = vmatpush.msrb.mxu3 %v322_v11  ;;  %1049 = vmatpush.msra.mxu2 %v390_v13  ;;  %v250_v23 = vld [vmem:[#allocation5 + $0x438] sm:$0xff]  ;;  %v655_v13 = vpop.f32.mrf.mxu1  ;;  %v1174_v1 = vld [vmem:[#allocation8 + $0x240] sm:$0xff] }
 0x103   :  { %1065 = vmatpush.msrb.mxu0 %v470_v16  ;;  %974 = vmatmul.f32.vlgmr.msrb.gmra.mxu2 %v1512_v22  ;;  %v314_v24 = vld [vmem:[#allocation5 + $0x638] sm:$0xff] }
 0x104   :  { %1011 = vmatpush.msrb.mxu1 %v254_v17  ;;  %1031 = vmatpush.msrb.mxu3 %v318_v18  ;;  %v382_v25 = vld [vmem:[#allocation5 + $0x858] sm:$0xff]  ;;  %v695_v17 = vpop.f32.mrf.mxu3  ;;  %v1110_v18 = vld [vmem:[#allocation8 + $0x40] sm:$0xff] }
 0x105   :  { %v462_v26 = vld [vmem:[#allocation5 + $0xad8] sm:$0xff]  ;;  %1050 = vmatpush.msra.mxu2 %v386_v19  ;;  %1066 = vmatpush.msrb.mxu0 %v466_v21  ;;  %v696_v19 = vadd.f32 %v695_v17, %v510_v6  ;;  %v1142_v21 = vld [vmem:[#allocation8 + $0x140] sm:$0xff] }
 0x106   :  { %v246_v27 = vld [vmem:[#allocation5 + $0x418] sm:$0xff]  ;;  %1012 = vmatpush.msrb.mxu1 %v250_v23  ;;  %1032 = vmatpush.msrb.mxu3 %v314_v24  ;;  %v656_v23 = vadd.f32 %v655_v13, %v636_v10  ;;  %v1115_v13 = vld [vmem:[#allocation8 + $0x68] sm:$0xff] }
 0x107   :  { %v310_v28 = vld [vmem:[#allocation5 + $0x618] sm:$0xff]  ;;  %1051 = vmatpush.msra.mxu2 %v382_v25  ;;  %1067 = vmatpush.msrb.mxu0 %v462_v26 }
 0x108   :  { %v378_v29 = vld [vmem:[#allocation5 + $0x838] sm:$0xff]  ;;  %1013 = vmatpush.msrb.mxu1 %v246_v27  ;;  %1033 = vmatpush.msrb.mxu3 %v310_v28  ;;  %v1194_v28 = vld [vmem:[#allocation8 + $0x2e0] sm:$0xff] }
 0x109   :  { %v458_v30 = vld [vmem:[#allocation5 + $0xab8] sm:$0xff]  ;;  %1052 = vmatpush.msra.mxu2 %v378_v29  ;;  %1034 = vmatmul.f32.vlgmr.msrb.gmra.mxu3 %v1513_v40  ;;  %v1106_v29 = vld [vmem:[#allocation8 + $0x20] sm:$0xff] }
 0x10a   :  { %v1132_v32 = vld [vmem:[#allocation8 + $0xf0] sm:$0xff]  ;;  %1068 = vmatpush.msrb.mxu0 %v458_v30  ;;  %v1138_v30 = vld [vmem:[#allocation8 + $0x120] sm:$0xff]  ;;  %v1125_v14 = vld [vmem:[#allocation8 + $0xb8] sm:$0xff] }
 0x10b   :  { %v1164_v33 = vld [vmem:[#allocation8 + $0x1f0] sm:$0xff]  ;;  %1236 = vmatpush.msra.mxu3 %v1132_v32  ;;  %v1117_v6 = vld [vmem:[#allocation8 + $0x78] sm:$0xff] }
 0x10c   :  { %v374_v34 = vld [vmem:[#allocation5 + $0x818] sm:$0xff]  ;;  %1256 = vmatpush.msra.mxu1 %v1164_v33  ;;  %v1809_v33 = vadd.f32 %v675_v63, %v656_v23  ;;  %v1143_v23 = vld [vmem:[#allocation8 + $0x148] sm:$0xff] }
 0x10d   :  { %v454_v35 = vld [vmem:[#allocation5 + $0xa98] sm:$0xff]  ;;  %1053 = vmatpush.msra.mxu2 %v374_v34  ;;  %1237 = vmatpush.msra.mxu3 %v1130_v36 }
 0x10e   :  { %v450_v7 = vld [vmem:[#allocation5 + $0xa78] sm:$0xff]  ;;  %1069 = vmatpush.msrb.mxu0 %v454_v35  ;;  %1257 = vmatpush.msra.mxu1 %v1162_v38  ;;  %v1190_v38 = vld [vmem:[#allocation8 + $0x2c0] sm:$0xff] }
 0x10f   :  { %v506_v12 = vld [vmem:[#allocation5 + $0xc38] sm:$0xff]  ;;  %1054 = vmatmul.f32.vlgmr.msra.gmra.mxu2 %v1515_v46 }
 0x110   :  { %v1128_v41 = vld [vmem:[#allocation8 + $0xd0] sm:$0xff]  ;;  %1070 = vmatpush.msrb.mxu0 %v450_v7  ;;  %1092 = vmatpush.msrb.mxu2 %v506_v12  ;;  %v1134_v7 = vld [vmem:[#allocation8 + $0x100] sm:$0xff]  ;;  %v1121_v63 = vld [vmem:[#allocation8 + $0x98] sm:$0xff] }
 0x111   :  { %v1514_v42 = vld.sshfl [vmem:[#allocation1 + $0x8] sm:$0xff pattern:$0x73625140]  ;;  %1238 = vmatpush.msra.mxu3 %v1128_v41  ;;  %v1516_v53 = vld.sshfl [vmem:[#allocation1 + $0x10] sm:$0xff pattern:$0x73625140] }
 0x112   :  { %994 = vmatmul.f32.vlgmr.msra.gmra.mxu0 %v1514_v42  ;;  %v1160_v43 = vld [vmem:[#allocation8 + $0x1d0] sm:$0xff]  ;;  %1014 = vmatmul.f32.vlgmr.msrb.gmra.mxu1 %v1516_v53  ;;  %v1098_v42 = vmax.f32 %v1809_v33, 0.0  ;;  %v1161_v53 = vld [vmem:[#allocation8 + $0x1d8] sm:$0xff]  ;;  %v1214_v33 = vld [vmem:[#allocation8 + $0x380] sm:$0xff] }
 0x113   :  { %v446_v44 = vld [vmem:[#allocation5 + $0xa58] sm:$0xff]  ;;  %1258 = vmatpush.msra.mxu1 %v1160_v43  ;;  %1239 = vmatpush.msra.mxu3 %v1126_v47  ;;  %v1131_v47 = vld [vmem:[#allocation8 + $0xe8] sm:$0xff] }
 0x114   :  { %v502_v50 = vld [vmem:[#allocation5 + $0xc18] sm:$0xff]  ;;  %1071 = vmatpush.msrb.mxu0 %v446_v44 }
 0x115   :  { %v442_v52 = vld [vmem:[#allocation5 + $0xa38] sm:$0xff]  ;;  %1259 = vmatpush.msra.mxu1 %v1158_v49  ;;  %1093 = vmatpush.msrb.mxu2 %v502_v50  ;;  %v1186_v50 = vld [vmem:[#allocation8 + $0x2a0] sm:$0xff] }
 0x116   :  { %v1124_v20 = vld [vmem:[#allocation8 + $0xb0] sm:$0xff]  ;;  %1072 = vmatpush.msrb.mxu0 %v442_v52  ;;  %v1133_v43 = vld [vmem:[#allocation8 + $0xf8] sm:$0xff] }
 0x117   :  { %v1156_v54 = vld [vmem:[#allocation8 + $0x1b0] sm:$0xff]  ;;  %1240 = vmatpush.msra.mxu3 %v1124_v20  ;;  %v1165_v44 = vld [vmem:[#allocation8 + $0x1f8] sm:$0xff] }
 0x118   :  { %v438_v2 = vld [vmem:[#allocation5 + $0xa18] sm:$0xff]  ;;  %1260 = vmatpush.msra.mxu1 %v1156_v54  ;;  %v1182_v54 = vld [vmem:[#allocation8 + $0x280] sm:$0xff] }
 0x119   :  { %v1120_v58 = vld [vmem:[#allocation8 + $0x90] sm:$0xff]  ;;  %1073 = vmatpush.msrb.mxu0 %v438_v2  ;;  %1241 = vmatpush.msra.mxu3 %v1122_v56  ;;  %v1129_v20 = vld [vmem:[#allocation8 + $0xd8] sm:$0xff]  ;;  %v1159_v2 = vld [vmem:[#allocation8 + $0x1c8] sm:$0xff] }
 0x11a   :  { %v1152_v59 = vld [vmem:[#allocation8 + $0x190] sm:$0xff]  ;;  %1261 = vmatpush.msra.mxu1 %v1154_v57 }
 0x11b   :  { %v1517_v15 = vld.sshfl [vmem:[#allocation1 + $0x28] sm:$0xff pattern:$0x73625140]  ;;  %v1518_v61 = vld.sshfl [vmem:[#allocation1 + $0x30] sm:$0xff pattern:$0x73625140]  ;;  %1242 = vmatpush.msra.mxu3 %v1120_v58 }
 0x11c   :  { %1074 = vmatmul.f32.vlgmr.msrb.gmra.mxu0 %v1517_v15  ;;  %1499 = vmatmul.msk.f32.vlgmr.msrb.gmra.mxu2 %vm535_vm0, %v1518_v61  ;;  %v1116_v0 = vld [vmem:[#allocation8 + $0x70] sm:$0xff]  ;;  %v1178_v15 = vld [vmem:[#allocation8 + $0x260] sm:$0xff]  ;;  %v1155_v61 = vld [vmem:[#allocation8 + $0x1a8] sm:$0xff] }
 0x11d   :  { %1262 = vmatpush.msra.mxu1 %v1152_v59  ;;  %1243 = vmatpush.msra.mxu3 %v1118_v60  ;;  %v1148_v3 = vld [vmem:[#allocation8 + $0x170] sm:$0xff]  ;;  %v1157_v59 = vld [vmem:[#allocation8 + $0x1b8] sm:$0xff]  ;;  %v1123_v60 = vld [vmem:[#allocation8 + $0xa8] sm:$0xff] }
 0x11e   :  { %v1112_v11 = vld [vmem:[#allocation8 + $0x50] sm:$0xff] }
 0x11f   :  { %1263 = vmatpush.msra.mxu1 %v1150_v62  ;;  %1244 = vmatpush.msra.mxu3 %v1116_v0  ;;  %v1144_v16 = vld [vmem:[#allocation8 + $0x150] sm:$0xff]  ;;  %v715_v25 = vpop.f32.mrf.mxu2  ;;  %v1153_v0 = vld [vmem:[#allocation8 + $0x198] sm:$0xff] }
 0x120   :  { %v1196_v22 = vld [vmem:[#allocation8 + $0x2f0] sm:$0xff]  ;;  %v716_v27 = vadd.f32 %v715_v25, %v696_v19  ;;  %v1145_v19 = vld [vmem:[#allocation8 + $0x158] sm:$0xff] }
 0x121   :  { %1264 = vmatpush.msra.mxu1 %v1148_v3  ;;  %1245 = vmatpush.msra.mxu3 %v1114_v5  ;;  %v1108_v24 = vld [vmem:[#allocation8 + $0x30] sm:$0xff]  ;;  %v1119_v3 = vld [vmem:[#allocation8 + $0x88] sm:$0xff]  ;;  %v1109_v25 = vld [vmem:[#allocation8 + $0x38] sm:$0xff] }
 0x122   :  { %1276 = vmatpush.msra.mxu2 %v1196_v22  ;;  %v1140_v26 = vld [vmem:[#allocation8 + $0x130] sm:$0xff]  ;;  %v1111_v22 = vld [vmem:[#allocation8 + $0x48] sm:$0xff] }
 0x123   :  { %1265 = vmatpush.msra.mxu1 %v1146_v8  ;;  %1246 = vmatpush.msra.mxu3 %v1112_v11  ;;  %v1192_v32 = vld [vmem:[#allocation8 + $0x2d0] sm:$0xff]  ;;  %v735_v35 = vpop.f32.mrf.mxu0  ;;  %v1149_v8 = vld [vmem:[#allocation8 + $0x178] sm:$0xff]  ;;  %v1170_v11 = vld [vmem:[#allocation8 + $0x220] sm:$0xff] }
 0x124   :  { %1277 = vmatpush.msra.mxu2 %v1194_v28  ;;  %v1104_v34 = vld [vmem:[#allocation8 + $0x10] sm:$0xff]  ;;  %v736_v37 = vadd.f32 %v735_v35, %v716_v27  ;;  %v1195_v27 = vld [vmem:[#allocation8 + $0x2e8] sm:$0xff] }
 0x125   :  { %1266 = vmatpush.msra.mxu1 %v1144_v16  ;;  %1247 = vmatpush.msra.mxu3 %v1110_v18  ;;  %v1136_v36 = vld [vmem:[#allocation8 + $0x110] sm:$0xff]  ;;  %v755_v40 = vpop.f32.mrf.mxu1  ;;  %v1147_v16 = vld [vmem:[#allocation8 + $0x168] sm:$0xff]  ;;  %v1113_v18 = vld [vmem:[#allocation8 + $0x58] sm:$0xff] }
 0x126   :  { %1278 = vmatpush.msra.mxu2 %v1192_v32  ;;  %v756_v12 = vadd.f32 %v755_v40, %v736_v37  ;;  %v1188_v41 = vld [vmem:[#allocation8 + $0x2b0] sm:$0xff]  ;;  %v1107_v28 = vld [vmem:[#allocation8 + $0x28] sm:$0xff]  ;;  %v1105_v32 = vld [vmem:[#allocation8 + $0x18] sm:$0xff] }
 0x127   :  { %1267 = vmatpush.msra.mxu1 %v1142_v21  ;;  %1248 = vmatpush.msra.mxu3 %v1108_v24  ;;  %v775_v45 = vpop.f32.mrf.mxu3  ;;  %v1184_v52 = vld [vmem:[#allocation8 + $0x290] sm:$0xff]  ;;  %v1166_v21 = vld [vmem:[#allocation8 + $0x200] sm:$0xff]  ;;  %v1197_v24 = vld [vmem:[#allocation8 + $0x2f8] sm:$0xff] }
 0x128   :  { %1279 = vmatpush.msra.mxu2 %v1190_v38  ;;  %v776_v46 = vadd.f32 %v775_v45, %v756_v12  ;;  %v1180_v58 = vld [vmem:[#allocation8 + $0x270] sm:$0xff]  ;;  %v1191_v35 = vld [vmem:[#allocation8 + $0x2c8] sm:$0xff]  ;;  %v1189_v40 = vld [vmem:[#allocation8 + $0x2b8] sm:$0xff] }
 0x129   :  { %1268 = vmatpush.msra.mxu1 %v1140_v26  ;;  %1249 = vmatpush.msra.mxu3 %v1106_v29  ;;  %v795_v49 = vpop.f32.mrf.mxu2  ;;  %v1176_v62 = vld [vmem:[#allocation8 + $0x250] sm:$0xff]  ;;  %v1141_v26 = vld [vmem:[#allocation8 + $0x138] sm:$0xff]  ;;  %v1139_v29 = vld [vmem:[#allocation8 + $0x128] sm:$0xff] }
 0x12a   :  { %1280 = vmatpush.msra.mxu2 %v1188_v41  ;;  %v796_v51 = vadd.f32 %v795_v49, %v776_v46  ;;  %v1172_v5 = vld [vmem:[#allocation8 + $0x230] sm:$0xff]  ;;  %v1103_v37 = vld [vmem:[#allocation8 + $0x8] sm:$0xff]  ;;  %v1181_v45 = vld [vmem:[#allocation8 + $0x278] sm:$0xff] }
 0x12b   :  { %1269 = vmatpush.msra.mxu1 %v1138_v30  ;;  %1250 = vmatpush.msra.mxu3 %v1104_v34  ;;  %v1228_v10 = vld [vmem:[#allocation8 + $0x3f0] sm:$0xff]  ;;  %v1193_v30 = vld [vmem:[#allocation8 + $0x2d8] sm:$0xff]  ;;  %v1135_v38 = vld [vmem:[#allocation8 + $0x108] sm:$0xff] }
 0x12c   :  { %1281 = vmatpush.msra.mxu2 %v1186_v50  ;;  %1296 = vmatpush.msra.mxu0 %v1228_v10  ;;  %v1168_v17 = vld [vmem:[#allocation8 + $0x210] sm:$0xff]  ;;  %v1137_v34 = vld [vmem:[#allocation8 + $0x118] sm:$0xff]  ;;  %v1187_v12 = vld [vmem:[#allocation8 + $0x2a8] sm:$0xff] }
 0x12d   :  { %1270 = vmatpush.msra.mxu1 %v1136_v36  ;;  %1251 = vmatpush.msra.mxu3 %v1102_v39  ;;  %v815_v56 = vpop.f32.mrf.mxu0  ;;  %v1226_v36 = vld [vmem:[#allocation8 + $0x3e0] sm:$0xff]  ;;  %v1224_v39 = vld [vmem:[#allocation8 + $0x3d0] sm:$0xff]  ;;  %v1175_v50 = vld [vmem:[#allocation8 + $0x248] sm:$0xff] }
 0x12e   :  { %1252 = vmatmul.f32.vlgmr.msra.gmra.mxu3 %v1098_v42  ;;  %1282 = vmatpush.msra.mxu2 %v1184_v52  ;;  %v1814_v57 = vadd.f32 %v815_v56, %v796_v51  ;;  %v1220_v41 = vld [vmem:[#allocation8 + $0x3b0] sm:$0xff]  ;;  %v1218_v46 = vld [vmem:[#allocation8 + $0x3a0] sm:$0xff]  ;;  %v511_v52 = vperm.slane %v1804_v31, 2 }
 0x12f   :  { %1271 = vmatpush.msra.mxu1 %v1134_v7  ;;  %1316 = vmatpush.msrb.mxu3 %v1133_v43  ;;  %v1222_v7 = vld [vmem:[#allocation8 + $0x3c0] sm:$0xff]  ;;  %v1185_v43 = vld [vmem:[#allocation8 + $0x298] sm:$0xff]  ;;  %v1212_v49 = vld [vmem:[#allocation8 + $0x370] sm:$0xff] }
 0x130   :  { %1283 = vmatpush.msra.mxu2 %v1182_v54  ;;  %v1099_v9 = vmax.f32 %v1814_v57, 0.0  ;;  %1297 = vmatpush.msra.mxu0 %v1226_v36  ;;  %v1210_v51 = vld [vmem:[#allocation8 + $0x360] sm:$0xff]  ;;  %v1208_v54 = vld [vmem:[#allocation8 + $0x350] sm:$0xff] }
 0x131   :  { %1336 = vmatpush.msrb.mxu1 %v1165_v44  ;;  %1317 = vmatpush.msrb.mxu3 %v1131_v47  ;;  %v1183_v44 = vld [vmem:[#allocation8 + $0x288] sm:$0xff]  ;;  %v1216_v47 = vld [vmem:[#allocation8 + $0x390] sm:$0xff] }
 0x132   :  { %1284 = vmatpush.msra.mxu2 %v1180_v58  ;;  %1272 = vmatmul.f32.vlgmr.msra.gmra.mxu1 %v1099_v9  ;;  %v1169_v58 = vld [vmem:[#allocation8 + $0x218] sm:$0xff] }
 0x133   :  { %1337 = vmatpush.msrb.mxu1 %v1163_v48  ;;  %1318 = vmatpush.msrb.mxu3 %v1129_v20  ;;  %v1179_v48 = vld [vmem:[#allocation8 + $0x268] sm:$0xff] }
 0x134   :  { %1285 = vmatpush.msra.mxu2 %v1178_v15  ;;  %1298 = vmatpush.msra.mxu0 %v1224_v39 }
 0x135   :  { %1338 = vmatpush.msrb.mxu1 %v1161_v53  ;;  %1319 = vmatpush.msrb.mxu3 %v1127_v55  ;;  %v1173_v53 = vld [vmem:[#allocation8 + $0x238] sm:$0xff]  ;;  %v1171_v55 = vld [vmem:[#allocation8 + $0x228] sm:$0xff] }
 0x136   :  { %1286 = vmatpush.msra.mxu2 %v1176_v62  ;;  %1299 = vmatpush.msra.mxu0 %v1222_v7  ;;  %v1198_v62 = vld [vmem:[#allocation8 + $0x300] sm:$0xff] }
 0x137   :  { %1339 = vmatpush.msrb.mxu1 %v1159_v2  ;;  %1320 = vmatpush.msrb.mxu3 %v1125_v14  ;;  %v1206_v2 = vld [vmem:[#allocation8 + $0x340] sm:$0xff]  ;;  %v1204_v14 = vld [vmem:[#allocation8 + $0x330] sm:$0xff] }
 0x138   :  { %1287 = vmatpush.msra.mxu2 %v1174_v1  ;;  %1300 = vmatpush.msra.mxu0 %v1220_v41 }
 0x139   :  { %1340 = vmatpush.msrb.mxu1 %v1157_v59  ;;  %1321 = vmatpush.msrb.mxu3 %v1123_v60  ;;  %v1167_v59 = vld [vmem:[#allocation8 + $0x208] sm:$0xff] }
 0x13a   :  { %1288 = vmatpush.msra.mxu2 %v1172_v5  ;;  %1301 = vmatpush.msra.mxu0 %v1218_v46  ;;  %v1227_v5 = vld [vmem:[#allocation8 + $0x3e8] sm:$0xff] }
 0x13b   :  { %1341 = vmatpush.msrb.mxu1 %v1155_v61  ;;  %1322 = vmatpush.msrb.mxu3 %v1121_v63  ;;  %v1200_v61 = vld [vmem:[#allocation8 + $0x310] sm:$0xff] }
 0x13c   :  { %1289 = vmatpush.msra.mxu2 %v1170_v11  ;;  %1302 = vmatpush.msra.mxu0 %v1216_v47  ;;  %v1225_v11 = vld [vmem:[#allocation8 + $0x3d8] sm:$0xff] }
 0x13d   :  { %1342 = vmatpush.msrb.mxu1 %v1153_v0  ;;  %1323 = vmatpush.msrb.mxu3 %v1119_v3  ;;  %v1229_v0 = vld [vmem:[#allocation8 + $0x3f8] sm:$0xff] }
 0x13e   :  { %1290 = vmatpush.msra.mxu2 %v1168_v17  ;;  %1303 = vmatpush.msra.mxu0 %v1214_v33  ;;  %v1412_v33 = vld [vmem:[%s1929_s5 + $0x70] sm:$0xff] }
 0x13f   :  { %1343 = vmatpush.msrb.mxu1 %v1151_v4  ;;  %1324 = vmatpush.msrb.mxu3 %v1117_v6 }
 0x140   :  { %1291 = vmatpush.msra.mxu2 %v1166_v21  ;;  %1304 = vmatpush.msra.mxu0 %v1212_v49  ;;  %v1219_v21 = vld [vmem:[#allocation8 + $0x3a8] sm:$0xff] }
 0x141   :  { %1344 = vmatpush.msrb.mxu1 %v1149_v8  ;;  %1325 = vmatpush.msrb.mxu3 %v1115_v13  ;;  %v1411_v49 = vld [vmem:[%s1929_s5 + $0x68] sm:$0xff] }
 0x142   :  { %1356 = vmatpush.msrb.mxu2 %v1197_v24  ;;  %1305 = vmatpush.msra.mxu0 %v1210_v51  ;;  %v1213_v24 = vld [vmem:[#allocation8 + $0x378] sm:$0xff]  ;;  %v1427_v51 = vld [vmem:[%s1929_s5 + $0xe8] sm:$0xff] }
 0x143   :  { %1345 = vmatpush.msrb.mxu1 %v1147_v16  ;;  %1326 = vmatpush.msrb.mxu3 %v1113_v18  ;;  %v1223_v16 = vld [vmem:[#allocation8 + $0x3c8] sm:$0xff]  ;;  %v1221_v18 = vld [vmem:[#allocation8 + $0x3b8] sm:$0xff] }
 0x144   :  { %1357 = vmatpush.msrb.mxu2 %v1195_v27  ;;  %1306 = vmatpush.msra.mxu0 %v1208_v54  ;;  %v1207_v27 = vld [vmem:[#allocation8 + $0x348] sm:$0xff]  ;;  %v1425_v54 = vld [vmem:[%s1929_s5 + $0xd8] sm:$0xff] }
 0x145   :  { %1346 = vmatpush.msrb.mxu1 %v1145_v19  ;;  %1327 = vmatpush.msrb.mxu3 %v1111_v22  ;;  %v1217_v22 = vld [vmem:[#allocation8 + $0x398] sm:$0xff] }
 0x146   :  { %1358 = vmatpush.msrb.mxu2 %v1193_v30  ;;  %v835_v20 = vpop.f32.mrf.mxu1  ;;  %1307 = vmatpush.msra.mxu0 %v1206_v2  ;;  %v1201_v30 = vld [vmem:[#allocation8 + $0x318] sm:$0xff] }
 0x147   :  { %1347 = vmatpush.msrb.mxu1 %v1143_v23  ;;  %1328 = vmatpush.msrb.mxu3 %v1109_v25  ;;  %v836_v56 = vadd.f32 %v835_v20, %v511_v52  ;;  %v1215_v23 = vld [vmem:[#allocation8 + $0x388] sm:$0xff]  ;;  %v1424_v2 = vld [vmem:[%s1929_s5 + $0xd0] sm:$0xff] }
 0x148   :  { %1359 = vmatpush.msrb.mxu2 %v1191_v35  ;;  %1308 = vmatpush.msra.mxu0 %v1204_v14  ;;  %v1211_v25 = vld [vmem:[#allocation8 + $0x368] sm:$0xff] }
 0x149   :  { %1348 = vmatpush.msrb.mxu1 %v1141_v26  ;;  %1329 = vmatpush.msrb.mxu3 %v1107_v28  ;;  %v1209_v26 = vld [vmem:[#allocation8 + $0x358] sm:$0xff]  ;;  %v1410_v52 = vld [vmem:[%s1929_s5 + $0x60] sm:$0xff] }
 0x14a   :  { %1360 = vmatpush.msrb.mxu2 %v1189_v40  ;;  %v1205_v28 = vld [vmem:[#allocation8 + $0x338] sm:$0xff]  ;;  %v1426_v20 = vld [vmem:[%s1929_s5 + $0xe0] sm:$0xff] }
 0x14b   :  { %1349 = vmatpush.msrb.mxu1 %v1139_v29  ;;  %1330 = vmatpush.msrb.mxu3 %v1105_v32  ;;  %v1203_v29 = vld [vmem:[#allocation8 + $0x328] sm:$0xff]  ;;  %v512_v32 = vperm.slane %v1804_v31, 3  ;;  %v1413_v31 = vld [vmem:[%s1929_s5 + $0x78] sm:$0xff] }
 0x14c   :  { %1361 = vmatpush.msrb.mxu2 %v1187_v12  ;;  %v875_v60 = vpop.f32.mrf.mxu0  ;;  %v1422_v14 = vld [vmem:[%s1929_s5 + $0xc0] sm:$0xff] }
 0x14d   :  { %1350 = vmatpush.msrb.mxu1 %v1137_v34  ;;  %1331 = vmatpush.msrb.mxu3 %v1103_v37  ;;  %v1199_v34 = vld [vmem:[#allocation8 + $0x308] sm:$0xff] }
 0x14e   :  { %1332 = vmatmul.f32.vlgmr.msrb.gmra.mxu3 %v1098_v42  ;;  %1362 = vmatpush.msrb.mxu2 %v1185_v43  ;;  %v1177_v42 = vld [vmem:[#allocation8 + $0x258] sm:$0xff]  ;;  %v855_v57 = vpop.f32.mrf.mxu3 }
 0x14f   :  { %1351 = vmatpush.msrb.mxu1 %v1135_v38  ;;  %v856_v15 = vadd.f32 %v855_v57, %v836_v56  ;;  %1434 = vmatpush.msra.mxu3 %v1413_v31  ;;  %v1407_v56 = vld [vmem:[%s1929_s5 + $0x48] sm:$0xff] }
 0x150   :  { %1352 = vmatmul.f32.vlgmr.msrb.gmra.mxu1 %v1099_v9  ;;  %1363 = vmatpush.msrb.mxu2 %v1183_v44  ;;  %v1202_v9 = vld [vmem:[#allocation8 + $0x320] sm:$0xff]  ;;  %v895_v1 = vpop.f32.mrf.mxu2  ;;  %v1423_v57 = vld [vmem:[%s1929_s5 + $0xc8] sm:$0xff] }
 0x151   :  { %1309 = vmatpush.msra.mxu0 %v1202_v9  ;;  %v876_v63 = vadd.f32 %v875_v60, %v856_v15  ;;  %1435 = vmatpush.msra.mxu3 %v1412_v33  ;;  %v1421_v9 = vld [vmem:[%s1929_s5 + $0xb8] sm:$0xff]  ;;  %v1404_v15 = vld [vmem:[%s1929_s5 + $0x30] sm:$0xff]  ;;  %v1403_v60 = vld [vmem:[%s1929_s5 + $0x28] sm:$0xff] }
 0x152   :  { %1364 = vmatpush.msrb.mxu2 %v1181_v45 }
 0x153   :  { %1310 = vmatpush.msra.mxu0 %v1200_v61  ;;  %v896_v4 = vadd.f32 %v895_v1, %v876_v63  ;;  %1436 = vmatpush.msra.mxu3 %v1411_v49  ;;  %v1402_v61 = vld [vmem:[%s1929_s5 + $0x20] sm:$0xff]  ;;  %v1400_v63 = vld [vmem:[%s1929_s5 + $0x10] sm:$0xff]  ;;  %v1399_v1 = vld [vmem:[%s1929_s5 + $0x8] sm:$0xff] }
 0x154   :  { %1365 = vmatpush.msrb.mxu2 %v1179_v48 }
 0x155   :  { %1311 = vmatpush.msra.mxu0 %v1198_v62  ;;  %1437 = vmatpush.msra.mxu3 %v1410_v52  ;;  %v1401_v62 = vld [vmem:[%s1929_s5 + $0x18] sm:$0xff] }
 0x156   :  { %1366 = vmatpush.msrb.mxu2 %v1177_v42  ;;  %v1429_v42 = vld [vmem:[%s1929_s5 + $0xf8] sm:$0xff] }
 0x157   :  { %1376 = vmatpush.msrb.mxu0 %v1229_v0  ;;  %1454 = vmatpush.msra.mxu1 %v1429_v42  ;;  %v1420_v0 = vld [vmem:[%s1929_s5 + $0xb0] sm:$0xff] }
 0x158   :  { %1367 = vmatpush.msrb.mxu2 %v1175_v50  ;;  %v1428_v50 = vld [vmem:[%s1929_s5 + $0xf0] sm:$0xff] }
 0x159   :  { %1377 = vmatpush.msrb.mxu0 %v1227_v5  ;;  %1455 = vmatpush.msra.mxu1 %v1428_v50  ;;  %v1418_v5 = vld [vmem:[%s1929_s5 + $0xa0] sm:$0xff] }
 0x15a   :  { %1368 = vmatpush.msrb.mxu2 %v1173_v53  ;;  %v1409_v53 = vld [vmem:[%s1929_s5 + $0x58] sm:$0xff] }
 0x15b   :  { %1378 = vmatpush.msrb.mxu0 %v1225_v11  ;;  %1456 = vmatpush.msra.mxu1 %v1427_v51  ;;  %v1414_v11 = vld [vmem:[%s1929_s5 + $0x80] sm:$0xff] }
 0x15c   :  { %1369 = vmatpush.msrb.mxu2 %v1171_v55  ;;  %v1408_v55 = vld [vmem:[%s1929_s5 + $0x50] sm:$0xff]  ;;  %1438 = vmatpush.msra.mxu3 %v1409_v53 }
 0x15d   :  { %1379 = vmatpush.msrb.mxu0 %v1223_v16  ;;  %1457 = vmatpush.msra.mxu1 %v1426_v20 }
 0x15e   :  { %1370 = vmatpush.msrb.mxu2 %v1169_v58  ;;  %1439 = vmatpush.msra.mxu3 %v1408_v55  ;;  %v1406_v58 = vld [vmem:[%s1929_s5 + $0x40] sm:$0xff] }
 0x15f   :  { %1380 = vmatpush.msrb.mxu0 %v1221_v18  ;;  %1458 = vmatpush.msra.mxu1 %v1425_v54 }
 0x160   :  { %1371 = vmatpush.msrb.mxu2 %v1167_v59  ;;  %1440 = vmatpush.msra.mxu3 %v1407_v56  ;;  %v1405_v59 = vld [vmem:[%s1929_s5 + $0x38] sm:$0xff] }
 0x161   :  { %1381 = vmatpush.msrb.mxu0 %v1219_v21  ;;  %1459 = vmatpush.msra.mxu1 %v1424_v2 }
 0x162   :  { %1441 = vmatpush.msra.mxu3 %v1406_v58 }
 0x163   :  { %1382 = vmatpush.msrb.mxu0 %v1217_v22  ;;  %1460 = vmatpush.msra.mxu1 %v1423_v57 }
 0x164   :  { %1442 = vmatpush.msra.mxu3 %v1405_v59 }
 0x165   :  { %v915_v3 = vpop.f32.mrf.mxu1  ;;  %1383 = vmatpush.msrb.mxu0 %v1215_v23  ;;  %1461 = vmatpush.msra.mxu1 %v1422_v14 }
 0x166   :  { %v916_v6 = vadd.f32 %v915_v3, %v896_v4  ;;  %1443 = vmatpush.msra.mxu3 %v1404_v15  ;;  %v1419_v3 = vld [vmem:[%s1929_s5 + $0xa8] sm:$0xff]  ;;  %v1398_v4 = vld [vmem:[%s1929_s5] sm:$0xff] }
 0x167   :  { %1384 = vmatpush.msrb.mxu0 %v1213_v24  ;;  %1462 = vmatpush.msra.mxu1 %v1421_v9 }
 0x168   :  { %1444 = vmatpush.msra.mxu3 %v1403_v60 }
 0x169   :  { %1385 = vmatpush.msrb.mxu0 %v1211_v25  ;;  %1463 = vmatpush.msra.mxu1 %v1420_v0 }
 0x16a   :  { %1445 = vmatpush.msra.mxu3 %v1402_v61 }
 0x16b   :  { %v935_v8 = vpop.f32.mrf.mxu3  ;;  %1386 = vmatpush.msrb.mxu0 %v1209_v26  ;;  %1464 = vmatpush.msra.mxu1 %v1419_v3 }
 0x16c   :  { %v936_v10 = vadd.f32 %v935_v8, %v916_v6  ;;  %1446 = vmatpush.msra.mxu3 %v1401_v62  ;;  %v1417_v6 = vld [vmem:[%s1929_s5 + $0x98] sm:$0xff]  ;;  %v1416_v8 = vld [vmem:[%s1929_s5 + $0x90] sm:$0xff] }
 0x16d   :  { %v955_v13 = vpop.f32.mrf.mxu0  ;;  %1387 = vmatpush.msrb.mxu0 %v1207_v27  ;;  %1465 = vmatpush.msra.mxu1 %v1418_v5 }
 0x16e   :  { %v956_v17 = vadd.f32 %v955_v13, %v936_v10  ;;  %1447 = vmatpush.msra.mxu3 %v1400_v63  ;;  %v1415_v10 = vld [vmem:[%s1929_s5 + $0x88] sm:$0xff]  ;;  %v1230_v13 = vld [vmem:[#allocation10] sm:$0x3]  ;;  %s1707_s5 = smov [#allocation13]  }
 0x16f   :  { %1388 = vmatpush.msrb.mxu0 %v1205_v28  ;;  %1466 = vmatpush.msra.mxu1 %v1417_v6  ;;  %v1233_v23 = vperm.slane %v1230_v13, 1  ;;  %s1481_s12 = sshll.u32 %s1707_s5, 4  ;;  %s1482_s12 = int_to_ptr.vmem [resolvable:$true] %s1481_s12 }
 0x170   :  { %v1100_v19 = vmax.f32 %v956_v17, 0.0  ;;  %1448 = vmatpush.msra.mxu3 %v1399_v1  ;;  %v1232_v17 = vperm.slane %v1230_v13, 0 }
 0x171   :  { %1389 = vmatpush.msrb.mxu0 %v1203_v29  ;;  %1467 = vmatpush.msra.mxu1 %v1416_v8 }
 0x172   :  { %1292 = vmatmul.f32.vlgmr.msra.gmra.mxu2 %v1100_v19  ;;  %1449 = vmatpush.msra.mxu3 %v1398_v4 }
 0x173   :  { %1390 = vmatpush.msrb.mxu0 %v1201_v30  ;;  %1468 = vmatpush.msra.mxu1 %v1415_v10 }
 0x175   :  { %1391 = vmatpush.msrb.mxu0 %v1199_v34  ;;  %1469 = vmatpush.msra.mxu1 %v1414_v11 }
 0x17a   :  { %1372 = vmatmul.f32.vlgmr.msrb.gmra.mxu2 %v1100_v19 }
 0x186   :  { %v975_v35 = vpop.f32.mrf.mxu2 }
 0x187   :  { %v976_v36 = vadd.f32 %v975_v35, %v512_v32 }
 0x18c   :  { %v1035_v40 = vpop.f32.mrf.mxu3 }
 0x18f   :  { %v995_v37 = vpop.f32.mrf.mxu0  ;;  %v1015_v39 = vpop.f32.mrf.mxu1 }
 0x190   :  { %v996_v38 = vadd.f32 %v995_v37, %v976_v36 }
 0x192   :  { %v1016_v7 = vadd.f32 %v1015_v39, %v996_v38  ;;  %v1055_v41 = vpop.f32.mrf.mxu2  ;;  %v1511_v39 = vld [vmem:[#allocation11] ss:$0 sm:$0xff] }
 0x194   :  { %v1036_v12 = vadd.f32 %v1035_v40, %v1016_v7 }
 0x196   :  { %v1056_v43 = vadd.f32 %v1055_v41, %v1036_v12 }
 0x199   :  { %v1075_v44 = vpop.f32.mrf.mxu0 }
 0x19a   :  { %v1076_v45 = vadd.f32 %v1075_v44, %v1056_v43 }
 0x19f   :  { %v1095_v46 = vpop.f32.mrf.mxu2 }
 0x1a0   :  { %v1096_v47 = vadd.f32 %v1095_v46, %v1076_v45 }
 0x1a2   :  { %v1101_v48 = vmax.f32 %v1096_v47, 0.0 }
 0x1a4   :  { %1312 = vmatmul.f32.vlgmr.msra.gmra.mxu0 %v1101_v48 }
 0x1ac   :  { %1392 = vmatmul.f32.vlgmr.msrb.gmra.mxu0 %v1101_v48 }
 0x1af   :  { %v1273_v18 = vpop.f32.mrf.mxu1 }
 0x1b1   :  { %v1253_v16 = vpop.f32.mrf.mxu3 }
 0x1b2   :  { %v1254_v21 = vadd.f32 %v1253_v16, %v1232_v17 }
 0x1b4   :  { %v1274_v22 = vadd.f32 %v1273_v18, %v1254_v21 }
 0x1cd   :  { %v1353_v30 = vpop.f32.mrf.mxu1 }
 0x1d1   :  { %v1333_v24 = vpop.f32.mrf.mxu3 }
 0x1d2   :  { %v1334_v27 = vadd.f32 %v1333_v24, %v1233_v23 }
 0x1d4   :  { %v1354_v34 = vadd.f32 %v1353_v30, %v1334_v27 }
 0x1f5   :  { %v1293_v19 = vpop.f32.mrf.mxu2 }
 0x1f6   :  { %v1294_v25 = vadd.f32 %v1293_v19, %v1274_v22 }
 0x1fd   :  { %v1373_v32 = vpop.f32.mrf.mxu2 }
 0x1fe   :  { %v1374_v35 = vadd.f32 %v1373_v32, %v1354_v34 }
 0x221   :  { %v1313_v26 = vpop.f32.mrf.mxu0 }
 0x222   :  { %v1314_v28 = vadd.f32 %v1313_v26, %v1294_v25 }
 0x224   :  { %v1396_v29 = vmax.f32 %v1314_v28, 0.0 }
 0x226   :  { %1450 = vmatmul.f32.vlgmr.msra.gmra.mxu3 %v1396_v29 }
 0x229   :  { %v1393_v36 = vpop.f32.mrf.mxu0 }
 0x22a   :  { %v1394_v37 = vadd.f32 %v1393_v36, %v1374_v35 }
 0x22c   :  { %v1397_v38 = vmax.f32 %v1394_v37, 0.0 }
 0x22e   :  { %1470 = vmatmul.f32.vlgmr.msra.gmra.mxu1 %v1397_v38 }
 0x2a9   :  { %v1451_v40 = vpop.f32.mrf.mxu3 }
 0x2aa   :  { %v1452_v7 = vadd.f32 %v1511_v39, %v1451_v40 }
 0x2ab   :  { %v1471_v12 = vpop.f32.mrf.mxu1 }
 0x2ac   :  { %v1472_v41 = vadd.f32 %v1471_v12, %v1452_v7 }
 0x2ae   :  { %1475 = vst.msk [vmem:[#allocation13] sm:$0x3] %vm1474_vm1, %v1472_v41 }
 0x2af   :  { %1486 = dma.vmem_to_hbm [thread:$0]  %s1482_s12, 32, %s1484_s1, [#allocation4]  }
 0x2b0   :  { %1695 = dma.done.wait [#allocation4], 32  }
 0x2b1   :  { %1696 = vsyncadd [#allocation4], 4294967264 }
 0x2b2   :  { %1491 = vsyncpa [#allocation3], 1 }
 0x2b3   :  { %1492 = vsyncpa [#allocation6], 1 }
 0x2b4   :  { %1493 = vsyncpa [#allocation9], 1 }
 0x2b5   :  { %1494 = vsyncpa [#allocation12], 1 }
 0x2b6   :  { %1495 = vsyncpa [#allocation4], 1 }

</bundles_post_ra>
